<compile_context>
chip_gen: v6e
topology: v6e:2x2x1
jax: 0.10.0
libtpu: 0.0.40
codegen_flags: <defaults>
</compile_context>

<pallas_src>
import functools

import jax
import jax.numpy as jnp
from jax.experimental import pallas as pl
from jax.experimental.pallas import tpu as pltpu

D_IN, D1, D2, D3 = 144, 1024, 512, 128
OUT_PAD = 128        # lane-dense padded output width (slice 12/1 lanes in wrapper)
SLOPE = 0.1


def _leaky(x):
    # max(x, 0.1*x) == LeakyReLU(0.1) for slope in (0, 1); single vmax on the VPU.
    return jnp.maximum(x, SLOPE * x)


def _round_up(x, m):
    return ((x + m - 1) // m) * m


def _pick_tiling(B):
    """Choose (tile_b, padded_batch)."""
    if B <= 16:
        # tiny-batch latency path: one 16-row step (bf16 sublane-packed)
        return 16, 16
    if B <= 1024:
        # split into two grid steps, each a multiple of 128, so the
        # ("parallel",) batch axis can run on both v7x TensorCores
        tile_b = _round_up(-(-B // 2), 128)
        return tile_b, 2 * tile_b
    tile_b = 512
    return tile_b, _round_up(B, tile_b)


def _mlp_kernel(x_ref, w1_ref, w2_ref, w3_ref, w4_ref, bias_ref, out_ref, *, n3):
    # Static, 128-aligned lane slices of the packed bias row.
    b1 = bias_ref[:, 0:D1]
    b2 = bias_ref[:, D1:D1 + D2]
    b3 = bias_ref[:, D1 + D2:D1 + D2 + n3]
    b4 = bias_ref[:, D1 + D2 + n3:D1 + D2 + n3 + OUT_PAD]

    # All matmuls take bf16 operands and accumulate in f32 on the MXU.
    x = x_ref[...]
    h = _leaky(jnp.dot(x, w1_ref[...],
                       preferred_element_type=jnp.float32) + b1)
    h = _leaky(jnp.dot(h.astype(jnp.bfloat16), w2_ref[...],
                       preferred_element_type=jnp.float32) + b2)
    # fused head: lanes [0:128] = fc3_1 branch, [128:256] = fc3_2 branch
    # (flag=True specialization passes the un-fused 512x128 fc3_2 weight here)
    h = _leaky(jnp.dot(h.astype(jnp.bfloat16), w3_ref[...],
                       preferred_element_type=jnp.float32) + b3)
    # block-diagonal final weight -> single lane-padded (tile_b, 128) bf16 slab
    o = _leaky(jnp.dot(h.astype(jnp.bfloat16), w4_ref[...],
                       preferred_element_type=jnp.float32) + b4)
    out_ref[...] = o.astype(out_ref.dtype)


@functools.partial(jax.jit, static_argnames=("flag",))
def net_forward(x, packed, flag=False):
    """Pallas implementation of the PyTorch `net.forward`.

    Returns x2 if flag else (x1, x2), matching PyTorch semantics (f32 outputs).
    """
    B = x.shape[0]
    tile_b, b_pad = _pick_tiling(B)

    xb = x.astype(jnp.bfloat16)
    if b_pad != B:
        xb = jnp.pad(xb, ((0, b_pad - B), (0, 0)))

    if flag:
        # static specialization: drop the x1 branch (fc3_1 / fc4_1) completely
        w3, w4, bias = packed["w32"], packed["w42p"], packed["bias_t"]
    else:
        w3, w4, bias = packed["w3"], packed["w4"], packed["bias_f"]
    n3 = w3.shape[1]

    flops = 2 * b_pad * (D_IN * D1 + D1 * D2 + D2 * n3 + n3 * OUT_PAD)
    weight_bytes = sum(int(a.size) * a.dtype.itemsize
                       for a in (packed["w1"], packed["w2"], w3, w4, bias))
    bytes_accessed = weight_bytes + int(xb.size) * 2 + b_pad * OUT_PAD * 2

    def _resident(arr):
        # weights/biases: same block for every grid step -> stay VMEM-resident
        return pl.BlockSpec(arr.shape, lambda i: (0, 0))

    out = pl.pallas_call(
        functools.partial(_mlp_kernel, n3=n3),
        out_shape=jax.ShapeDtypeStruct((b_pad, OUT_PAD), jnp.bfloat16),
        grid=(b_pad // tile_b,),
        in_specs=[
            pl.BlockSpec((tile_b, D_IN), lambda i: (i, 0)),
            _resident(packed["w1"]),
            _resident(packed["w2"]),
            _resident(w3),
            _resident(w4),
            _resident(bias),
        ],
        out_specs=pl.BlockSpec((tile_b, OUT_PAD), lambda i: (i, 0)),
        compiler_params=pltpu.CompilerParams(
            dimension_semantics=("parallel",),
            vmem_limit_bytes=32 << 20,
        ),
        cost_estimate=pl.CostEstimate(
            flops=flops, transcendentals=0, bytes_accessed=bytes_accessed),
    )(xb, packed["w1"], packed["w2"], w3, w4, bias)

    if flag:
        return out[:B, 0:1].astype(jnp.float32)
    return (out[:B, 0:12].astype(jnp.float32), out[:B, 12:13].astype(jnp.float32))


# ----------------------------- parameter handling -----------------------------

def _xavier_uniform(key, fan_out, fan_in):
    # Matches torch.nn.init.xavier_uniform_ (gain=1) on a (out, in) weight.
    limit = (6.0 / (fan_in + fan_out)) ** 0.5
    return jax.random.uniform(key, (fan_out, fan_in), jnp.float32, -limit, limit)


def _linear_bias(key, fan_in, fan_out):
    # Default nn.Linear bias init: U(-1/sqrt(fan_in), 1/sqrt(fan_in)).
    bound = 1.0 / (fan_in ** 0.5)
    return jax.random.uniform(key, (1, fan_out), jnp.float32, -bound, bound)


def init_params(key):
    """Raw params in torch layout: w* is (out, in), b* is (1, out)."""
    dims = {
        "1": (144, 1024),
        "2": (1024, 512),
        "31": (512, 128),
        "32": (512, 128),
        "41": (128, 12),
        "42": (128, 1),
    }
    raw = {}
    keys = jax.random.split(key, 2 * len(dims))
    for i, (name, (fin, fout)) in enumerate(dims.items()):
        raw["w" + name] = _xavier_uniform(keys[2 * i], fout, fin)
        raw["b" + name] = _linear_bias(keys[2 * i + 1], fin, fout)
    return raw


def pack_params(raw):
    """Pre-transpose/fuse/cast weights into kernel-ready form (one-time cost)."""
    bf = lambda w: jnp.asarray(w, jnp.bfloat16)
    p = {}
    p["w1"] = bf(raw["w1"].T)
    p["w2"] = bf(raw["w2"].T)

    # fused fc3 head: [w31 | w32] -> (512, 256), exactly one 256-wide MXU pass
    p["w3"] = bf(jnp.concatenate([raw["w31"].T, raw["w32"].T], axis=1))
    b3 = jnp.concatenate([raw["b31"], raw["b32"]], axis=1)

    # block-diagonal fc4, padded to 128 lanes: cols 0:12 = fc4_1, col 12 = fc4_2
    w4 = jnp.zeros((2 * D3, OUT_PAD), jnp.float32)
    w4 = w4.at[:D3, :12].set(raw["w41"].T)
    w4 = w4.at[D3:, 12:13].set(raw["w42"].T)
    p["w4"] = bf(w4)
    b4 = jnp.zeros((1, OUT_PAD), jnp.float32)
    b4 = b4.at[:, :12].set(raw["b41"])
    b4 = b4.at[:, 12:13].set(raw["b42"])

    # packed bias row for flag=False: [b1 | b2 | b3(256) | b4(128)] -> (1, 1920)
    p["bias_f"] = jnp.concatenate([raw["b1"], raw["b2"], b3, b4], axis=1)

    # flag=True specialization: only the x2 branch
    p["w32"] = bf(raw["w32"].T)
    p["w42p"] = bf(jnp.zeros((D3, OUT_PAD), jnp.float32).at[:, 0:1].set(raw["w42"].T))
    b42p = jnp.zeros((1, OUT_PAD), jnp.float32).at[:, 0:1].set(raw["b42"])
    # packed bias row for flag=True: [b1 | b2 | b32(128) | b42p(128)] -> (1, 1792)
    p["bias_t"] = jnp.concatenate([raw["b1"], raw["b2"], raw["b32"], b42p], axis=1)
    return p


# ------------------------------- reference -----------------------------------

def _reference_forward(x, raw, flag=False):
    # Mirrors the kernel's numerics: bf16 matmul operands, f32 accumulation,
    # and the bf16 output slab rounding.
    def lin(h, w, b):
        y = jnp.dot(h.astype(jnp.bfloat16), w.T.astype(jnp.bfloat16),
                    preferred_element_type=jnp.float32) + b
        return _leaky(y)

    h = lin(x, raw["w1"], raw["b1"])
    h = lin(h, raw["w2"], raw["b2"])
    x1 = lin(h, raw["w31"], raw["b31"])
    x2 = lin(h, raw["w32"], raw["b32"])
    x1 = lin(x1, raw["w41"], raw["b41"])
    x2 = lin(x2, raw["w42"], raw["b42"])
    cast = lambda t: t.astype(jnp.bfloat16).astype(jnp.float32)
    if flag:
        return cast(x2)
    return (cast(x1), cast(x2))


if __name__ == "__main__":
    key = jax.random.PRNGKey(0)
    pkey, xkey, xkey2 = jax.random.split(key, 3)
    raw = init_params(pkey)
    packed = pack_params(raw)

    # --- small-batch path (single 16-row grid step) ---
    batch = 8
    x = jax.random.normal(xkey, (batch, D_IN), jnp.float32)

    x1, x2 = net_forward(x, packed, flag=False)        # returns (x1, x2)
    jax.block_until_ready((x1, x2))
    x2_only = net_forward(x, packed, flag=True)        # returns x2 only
    jax.block_until_ready(x2_only)

    r1, r2 = _reference_forward(x, raw, flag=False)
    assert x1.shape == (batch, 12) and x2.shape == (batch, 1)
    assert jnp.allclose(x1, r1, atol=2e-3, rtol=2e-2)
    assert jnp.allclose(x2, r2, atol=2e-3, rtol=2e-2)
    assert jnp.allclose(x2_only, x2, atol=1e-5, rtol=1e-5)

    # --- medium-batch path (2 grid steps of 128 rows, exercises padding) ---
    batch2 = 200
    xm = jax.random.normal(xkey2, (batch2, D_IN), jnp.float32)
    y1, y2 = net_forward(xm, packed, flag=False)
    jax.block_until_ready((y1, y2))
    s1, s2 = _reference_forward(xm, raw, flag=False)
    assert y1.shape == (batch2, 12) and y2.shape == (batch2, 1)
    assert jnp.allclose(y1, s1, atol=2e-3, rtol=2e-2)
    assert jnp.allclose(y2, s2, atol=2e-3, rtol=2e-2)

    print("KERNEL_OK")
</pallas_src>

<mosaic_0001>
module attributes {stable_mosaic.version = 11 : i64} {
  func.func @_mlp_kernel(%arg0: i32, %arg1: memref<16x144xbf16, #tpu.memory_space<vmem>>, %arg2: memref<144x1024xbf16, #tpu.memory_space<vmem>>, %arg3: memref<1024x512xbf16, #tpu.memory_space<vmem>>, %arg4: memref<512x256xbf16, #tpu.memory_space<vmem>>, %arg5: memref<256x128xbf16, #tpu.memory_space<vmem>>, %arg6: memref<1x1920xf32, #tpu.memory_space<vmem>>, %arg7: memref<16x128xbf16, #tpu.memory_space<vmem>>) attributes {dimension_semantics = [#tpu.dimension_semantics<parallel>], iteration_bounds = array<i64: 1>, scalar_prefetch = 0 : i64, scratch_operands = 0 : i64, tpu.core_type = #tpu.core_type<tc>, window_params = [{transform_indices = @transform_0, window_bounds = array<i64: 16, 144>}, {pipeline_mode = #tpu.pipeline_mode<synchronous>, transform_indices = @transform_1, window_bounds = array<i64: 144, 1024>}, {pipeline_mode = #tpu.pipeline_mode<synchronous>, transform_indices = @transform_2, window_bounds = array<i64: 1024, 512>}, {pipeline_mode = #tpu.pipeline_mode<synchronous>, transform_indices = @transform_3, window_bounds = array<i64: 512, 256>}, {pipeline_mode = #tpu.pipeline_mode<synchronous>, transform_indices = @transform_4, window_bounds = array<i64: 256, 128>}, {pipeline_mode = #tpu.pipeline_mode<synchronous>, transform_indices = @transform_5, window_bounds = array<i64: 1, 1920>}, {transform_indices = @transform_6, window_bounds = array<i64: 16, 128>}]} {
    %c0 = arith.constant 0 : index
    %c0_0 = arith.constant 0 : index
    %0 = vector.load %arg6[%c0, %c0_0] : memref<1x1920xf32, #tpu.memory_space<vmem>>, vector<1x1024xf32>
    %c0_1 = arith.constant 0 : index
    %c1024 = arith.constant 1024 : index
    %1 = vector.load %arg6[%c0_1, %c1024] : memref<1x1920xf32, #tpu.memory_space<vmem>>, vector<1x512xf32>
    %c0_2 = arith.constant 0 : index
    %c1536 = arith.constant 1536 : index
    %2 = vector.load %arg6[%c0_2, %c1536] : memref<1x1920xf32, #tpu.memory_space<vmem>>, vector<1x256xf32>
    %c0_3 = arith.constant 0 : index
    %c1792 = arith.constant 1792 : index
    %3 = vector.load %arg6[%c0_3, %c1792] : memref<1x1920xf32, #tpu.memory_space<vmem>>, vector<1x128xf32>
    %c0_4 = arith.constant 0 : index
    %c0_5 = arith.constant 0 : index
    %4 = vector.load %arg1[%c0_4, %c0_5] : memref<16x144xbf16, #tpu.memory_space<vmem>>, vector<16x144xbf16>
    %c0_6 = arith.constant 0 : index
    %c0_7 = arith.constant 0 : index
    %5 = vector.load %arg2[%c0_6, %c0_7] : memref<144x1024xbf16, #tpu.memory_space<vmem>>, vector<144x1024xbf16>
    %cst = arith.constant dense<0.000000e+00> : vector<16x1024xf32>
    %6 = tpu.matmul %4, %5, %cst {dimension_numbers = #tpu.dot_dimension_numbers<[1], [0], [0], [1], [0, 0, 1, 1], [], []>} : vector<16x144xbf16>, vector<144x1024xbf16>, vector<16x1024xf32> -> vector<16x1024xf32>
    %7 = vector.broadcast %0 : vector<1x1024xf32> to vector<16x1024xf32>
    %8 = arith.addf %6, %7 : vector<16x1024xf32>
    %cst_8 = arith.constant 1.000000e-01 : f32
    %9 = vector.broadcast %cst_8 : f32 to vector<16x1024xf32>
    %10 = arith.mulf %9, %8 : vector<16x1024xf32>
    %11 = arith.maximumf %8, %10 : vector<16x1024xf32>
    %12 = arith.truncf %11 : vector<16x1024xf32> to vector<16x1024xbf16>
    %c0_9 = arith.constant 0 : index
    %c0_10 = arith.constant 0 : index
    %13 = vector.load %arg3[%c0_9, %c0_10] : memref<1024x512xbf16, #tpu.memory_space<vmem>>, vector<1024x512xbf16>
    %cst_11 = arith.constant dense<0.000000e+00> : vector<16x512xf32>
    %14 = tpu.matmul %12, %13, %cst_11 {dimension_numbers = #tpu.dot_dimension_numbers<[1], [0], [0], [1], [0, 0, 1, 1], [], []>} : vector<16x1024xbf16>, vector<1024x512xbf16>, vector<16x512xf32> -> vector<16x512xf32>
    %15 = vector.broadcast %1 : vector<1x512xf32> to vector<16x512xf32>
    %16 = arith.addf %14, %15 : vector<16x512xf32>
    %cst_12 = arith.constant 1.000000e-01 : f32
    %17 = vector.broadcast %cst_12 : f32 to vector<16x512xf32>
    %18 = arith.mulf %17, %16 : vector<16x512xf32>
    %19 = arith.maximumf %16, %18 : vector<16x512xf32>
    %20 = arith.truncf %19 : vector<16x512xf32> to vector<16x512xbf16>
    %c0_13 = arith.constant 0 : index
    %c0_14 = arith.constant 0 : index
    %21 = vector.load %arg4[%c0_13, %c0_14] : memref<512x256xbf16, #tpu.memory_space<vmem>>, vector<512x256xbf16>
    %cst_15 = arith.constant dense<0.000000e+00> : vector<16x256xf32>
    %22 = tpu.matmul %20, %21, %cst_15 {dimension_numbers = #tpu.dot_dimension_numbers<[1], [0], [0], [1], [0, 0, 1, 1], [], []>} : vector<16x512xbf16>, vector<512x256xbf16>, vector<16x256xf32> -> vector<16x256xf32>
    %23 = vector.broadcast %2 : vector<1x256xf32> to vector<16x256xf32>
    %24 = arith.addf %22, %23 : vector<16x256xf32>
    %cst_16 = arith.constant 1.000000e-01 : f32
    %25 = vector.broadcast %cst_16 : f32 to vector<16x256xf32>
    %26 = arith.mulf %25, %24 : vector<16x256xf32>
    %27 = arith.maximumf %24, %26 : vector<16x256xf32>
    %28 = arith.truncf %27 : vector<16x256xf32> to vector<16x256xbf16>
    %c0_17 = arith.constant 0 : index
    %c0_18 = arith.constant 0 : index
    %29 = vector.load %arg5[%c0_17, %c0_18] : memref<256x128xbf16, #tpu.memory_space<vmem>>, vector<256x128xbf16>
    %cst_19 = arith.constant dense<0.000000e+00> : vector<16x128xf32>
    %30 = tpu.matmul %28, %29, %cst_19 {dimension_numbers = #tpu.dot_dimension_numbers<[1], [0], [0], [1], [0, 0, 1, 1], [], []>} : vector<16x256xbf16>, vector<256x128xbf16>, vector<16x128xf32> -> vector<16x128xf32>
    %31 = vector.broadcast %3 : vector<1x128xf32> to vector<16x128xf32>
    %32 = arith.addf %30, %31 : vector<16x128xf32>
    %cst_20 = arith.constant 1.000000e-01 : f32
    %33 = vector.broadcast %cst_20 : f32 to vector<16x128xf32>
    %34 = arith.mulf %33, %32 : vector<16x128xf32>
    %35 = arith.maximumf %32, %34 : vector<16x128xf32>
    %36 = arith.truncf %35 : vector<16x128xf32> to vector<16x128xbf16>
    %c0_21 = arith.constant 0 : index
    %c0_22 = arith.constant 0 : index
    %37 = vector.load %arg7[%c0_21, %c0_22] : memref<16x128xbf16, #tpu.memory_space<vmem>>, vector<16x128xbf16>
    tpu.vector_store %arg7[%c0_21, %c0_22], %36 {strides = array<i32>} : memref<16x128xbf16, #tpu.memory_space<vmem>>, vector<16x128xbf16>,
    return
  }
  func.func @transform_0(%arg0: i32) -> (i32, i32) {
    %c0_i32 = arith.constant 0 : i32
    %c0_i32_0 = arith.constant 0 : i32
    return %arg0, %c0_i32 : i32, i32
  }
  func.func @transform_1(%arg0: i32) -> (i32, i32) {
    %c0_i32 = arith.constant 0 : i32
    %c0_i32_0 = arith.constant 0 : i32
    %c0_i32_1 = arith.constant 0 : i32
    return %c0_i32, %c0_i32_0 : i32, i32
  }
  func.func @transform_2(%arg0: i32) -> (i32, i32) {
    %c0_i32 = arith.constant 0 : i32
    %c0_i32_0 = arith.constant 0 : i32
    %c0_i32_1 = arith.constant 0 : i32
    return %c0_i32, %c0_i32_0 : i32, i32
  }
  func.func @transform_3(%arg0: i32) -> (i32, i32) {
    %c0_i32 = arith.constant 0 : i32
    %c0_i32_0 = arith.constant 0 : i32
    %c0_i32_1 = arith.constant 0 : i32
    return %c0_i32, %c0_i32_0 : i32, i32
  }
  func.func @transform_4(%arg0: i32) -> (i32, i32) {
    %c0_i32 = arith.constant 0 : i32
    %c0_i32_0 = arith.constant 0 : i32
    %c0_i32_1 = arith.constant 0 : i32
    return %c0_i32, %c0_i32_0 : i32, i32
  }
  func.func @transform_5(%arg0: i32) -> (i32, i32) {
    %c0_i32 = arith.constant 0 : i32
    %c0_i32_0 = arith.constant 0 : i32
    %c0_i32_1 = arith.constant 0 : i32
    return %c0_i32, %c0_i32_0 : i32, i32
  }
  func.func @transform_6(%arg0: i32) -> (i32, i32) {
    %c0_i32 = arith.constant 0 : i32
    %c0_i32_0 = arith.constant 0 : i32
    return %arg0, %c0_i32 : i32, i32
  }
}

</mosaic_0001>

<bundles_post_ra>
// kernel: net_forward.1
= control target key start
LH: loop header
LB: loop body
LE: loop exit
PB: predicated region body
PF: predicated region fallthrough
CT: control target
= control target key end

     0   :  { %11 = vsyncpa [#allocation3], 0  ;;  %s4618_s0 = inlined_call_operand.vmem [shape: bf16[16,144], index: 0, kind: input, shape index: {}]   ;;  %s4619_s1 = inlined_call_operand.hbm [shape: bf16[144,1024], index: 1, kind: input, shape index: {}]   ;;  %s4620_s2 = inlined_call_operand.hbm [shape: bf16[1024,512], index: 2, kind: input, shape index: {}]   ;;  %s4621_s3 = inlined_call_operand.hbm [shape: bf16[512,256], index: 3, kind: input, shape index: {}]   ;;  %s4622_s4 = inlined_call_operand.hbm [shape: bf16[256,128], index: 4, kind: input, shape index: {}]   ;;  %s4623_s5 = inlined_call_operand.vmem [shape: f32[1,1920], index: 5, kind: input, shape index: {}]   ;;  %s4624_s6 = inlined_call_operand.vmem [shape: bf16[16,128], index: 6, kind: output, shape index: {}]  }
   0x1   :  { %12 = vsyncpa [#allocation5], 0 }
   0x2   :  { %13 = vsyncpa [#allocation8], 0  ;;  %s4434_s21 = smov [#allocation4]  }
   0x3   :  { %s33_s22 = sshll.u32 %s4434_s21, 4  ;;  %s34_s22 = int_to_ptr.vmem [resolvable:$true] %s33_s22 }
   0x4   :  { %s4356_s23 = scalar_lea.vmem %s34_s22, 32768  ;;  %p4361_p1 = scmp.lt.s32.totalorder %s34_s22, %s34_s22 }
   0x5   :  { %p4357_p0 = scmp.ne.s32.totalorder %s34_s22, %s4356_s23  ;;  %p4362_p2 = scmp.lt.s32.totalorder %s4356_s23, %s4356_s23 }
   0x7   :  { %p4363_p3 = por %p4362_p2, %p4361_p1 }
   0x9   :  { %p4364_p4 = pnand %p4363_p3, %p4357_p0 }
   0xb   :  { %4367 = shalt.err (!%p4364_p4)
}
   0xc   :  { %s4435_s24 = smov 256   ;;  %s4436_s25 = smov 16  }
   0xd   :  { %39 = dma.hbm_to_vmem [thread:$0]  %s4620_s2, 32768, %s34_s22, [#allocation5], %s4435_s24, %s4435_s24, %s4436_s25  }
   0xe   :  { %s4437_s28 = smov [#allocation2]  }
   0xf   :  { %s21_s29 = sshll.u32 %s4437_s28, 4  ;;  %s22_s29 = int_to_ptr.vmem [resolvable:$true] %s21_s29 }
  0x10   :  { %s4376_s30 = scalar_lea.vmem %s22_s29, 9216  ;;  %p4381_p6 = scmp.lt.s32.totalorder %s22_s29, %s22_s29 }
  0x11   :  { %p4377_p5 = scmp.ne.s32.totalorder %s22_s29, %s4376_s30  ;;  %p4382_p7 = scmp.lt.s32.totalorder %s4376_s30, %s4376_s30 }
  0x13   :  { %p4383_p8 = por %p4382_p7, %p4381_p6 }
  0x15   :  { %p4384_p9 = pnand %p4383_p8, %p4377_p5 }
  0x17   :  { %4387 = shalt.err (!%p4384_p9)
}
  0x18   :  { %s4438_s7 = smov 512   ;;  %s4439_s8 = smov 32  }
  0x19   :  { %27 = dma.hbm_to_vmem [thread:$0]  %s4619_s1, 9216, %s22_s29, [#allocation3], %s4438_s7, %s4438_s7, %s4439_s8  }
  0x1a   :  { %s4440_s11 = smov [#allocation6]  }
  0x1b   :  { %s45_s12 = sshll.u32 %s4440_s11, 4  ;;  %s46_s12 = int_to_ptr.vmem [resolvable:$true] %s45_s12 }
  0x1c   :  { %s4396_s2 = scalar_lea.vmem %s46_s12, 8192  ;;  %p4401_p11 = scmp.lt.s32.totalorder %s46_s12, %s46_s12 }
  0x1d   :  { %p4397_p10 = scmp.ne.s32.totalorder %s46_s12, %s4396_s2  ;;  %p4402_p12 = scmp.lt.s32.totalorder %s4396_s2, %s4396_s2 }
  0x1f   :  { %p4403_p13 = por %p4402_p12, %p4401_p11 }
  0x21   :  { %p4404_p0 = pnand %p4403_p13, %p4397_p10 }
  0x23   :  { %4407 = shalt.err (!%p4404_p0)
}
  0x24   :  { %s4441_s13 = smov 128   ;;  %s4442_s14 = smov 8  }
  0x25   :  { %51 = dma.hbm_to_vmem [thread:$0]  %s4621_s3, 8192, %s46_s12, [#allocation5], %s4441_s13, %s4441_s13, %s4442_s14  }
  0x26   :  { %s4443_s17 = smov [#allocation7]  }
  0x27   :  { %s57_s18 = sshll.u32 %s4443_s17, 4  ;;  %s58_s18 = int_to_ptr.vmem [resolvable:$true] %s57_s18 }
  0x28   :  { %s4416_s1 = scalar_lea.vmem %s58_s18, 2048  ;;  %p4421_p2 = scmp.lt.s32.totalorder %s58_s18, %s58_s18 }
  0x29   :  { %p4417_p1 = scmp.ne.s32.totalorder %s58_s18, %s4416_s1  ;;  %p4422_p3 = scmp.lt.s32.totalorder %s4416_s1, %s4416_s1 }
  0x2b   :  { %p4423_p4 = por %p4422_p3, %p4421_p2 }
  0x2d   :  { %p4424_p5 = pnand %p4423_p4, %p4417_p1 }
  0x2f   :  { %4427 = shalt.err (!%p4424_p5)
}
  0x30   :  { %s4444_s19 = smov 64   ;;  %s4445_s20 = smov 4  }
  0x31   :  { %63 = dma.hbm_to_vmem [thread:$0]  %s4622_s4, 2048, %s58_s18, [#allocation8], %s4444_s19, %s4444_s19, %s4445_s20  }
  0x32   :  { %4428 = dma.done.wait [#allocation3], 9216  }
  0x33   :  { %4429 = vsyncadd [#allocation3], 4294958080 }
  0x34   :  { %4430 = dma.done.wait [#allocation5], 40960  }
  0x35   :  { %4431 = vsyncadd [#allocation5], 4294926336 }
  0x36   :  { %4432 = dma.done.wait [#allocation8], 2048  }
  0x37   :  { %4433 = vsyncadd [#allocation8], 4294965248  ;;  %v141_v0 = vld [vmem:[#allocation2 + $0x1c0] sm:$0xff]  ;;  %v142_v2 = vld [vmem:[#allocation2 + $0x1c8] sm:$0xff]  ;;  %vm567_vm0 = vcmask 130048  }
  0x38   :  { %v145_v1 = vld [vmem:[#allocation2 + $0x1e0] sm:$0xff]  ;;  %v146_v4 = vld [vmem:[#allocation2 + $0x1e8] sm:$0xff] }
  0x39   :  { %v3450_v3 = vcombine.high %v141_v0, %v145_v1  ;;  %v3449_v5 = vcombine.low %v141_v0, %v145_v1  ;;  %v133_v6 = vld [vmem:[#allocation2 + $0x180] sm:$0xff]  ;;  %v3452_v8 = vcombine.high %v142_v2, %v146_v4  ;;  %v3451_v9 = vcombine.low %v142_v2, %v146_v4  ;;  %v134_v11 = vld [vmem:[#allocation2 + $0x188] sm:$0xff] }
  0x3a   :  { %v137_v7 = vld [vmem:[#allocation2 + $0x1a0] sm:$0xff]  ;;  %v138_v12 = vld [vmem:[#allocation2 + $0x1a8] sm:$0xff] }
  0x3b   :  { %v3442_v10 = vcombine.high %v133_v6, %v137_v7  ;;  %v125_v13 = vld [vmem:[#allocation2 + $0x140] sm:$0xff]  ;;  %571 = vmatprep.subr.bf16.mxu0 %v3450_v3  ;;  %v3444_v14 = vcombine.high %v134_v11, %v138_v12  ;;  %v126_v16 = vld [vmem:[#allocation2 + $0x148] sm:$0xff]  ;;  %614 = vmatprep.subr.bf16.mxu1 %v3452_v8  ;;  %v3441_v18 = vcombine.low %v133_v6, %v137_v7  ;;  %v143_v7 = vld [vmem:[#allocation2 + $0x1d0] sm:$0xff] }
  0x3c   :  { %v129_v15 = vld [vmem:[#allocation2 + $0x160] sm:$0xff]  ;;  %v130_v17 = vld [vmem:[#allocation2 + $0x168] sm:$0xff]  ;;  %572 = vmatpush1.bf16.msra.mxu0 %v3449_v5  ;;  %615 = vmatpush1.bf16.msra.mxu1 %v3451_v9  ;;  %v3443_v19 = vcombine.low %v134_v11, %v138_v12  ;;  %v147_v8 = vld [vmem:[#allocation2 + $0x1f0] sm:$0xff] }
  0x3d   :  { %573 = vmatprep.subr.bf16.mxu0 %v3442_v10  ;;  %v3434_v20 = vcombine.high %v125_v13, %v129_v15  ;;  %616 = vmatprep.subr.bf16.mxu1 %v3444_v14  ;;  %v3436_v21 = vcombine.high %v126_v16, %v130_v17  ;;  %v117_v22 = vld [vmem:[#allocation2 + $0x100] sm:$0xff]  ;;  %v118_v24 = vld [vmem:[#allocation2 + $0x108] sm:$0xff]  ;;  %v3433_v26 = vcombine.low %v125_v13, %v129_v15  ;;  %v144_v9 = vld [vmem:[#allocation2 + $0x1d8] sm:$0xff] }
  0x3e   :  { %v121_v23 = vld [vmem:[#allocation2 + $0x120] sm:$0xff]  ;;  %v122_v25 = vld [vmem:[#allocation2 + $0x128] sm:$0xff]  ;;  %v3435_v27 = vcombine.low %v126_v16, %v130_v17  ;;  %v148_v10 = vld [vmem:[#allocation2 + $0x1f8] sm:$0xff]  ;;  %v3454_v14 = vcombine.high %v143_v7, %v147_v8 }
  0x3f   :  { %v3426_v28 = vcombine.high %v117_v22, %v121_v23  ;;  %v3428_v29 = vcombine.high %v118_v24, %v122_v25  ;;  %v109_v30 = vld [vmem:[#allocation2 + $0xc0] sm:$0xff]  ;;  %v110_v32 = vld [vmem:[#allocation2 + $0xc8] sm:$0xff]  ;;  %v3425_v34 = vcombine.low %v117_v22, %v121_v23  ;;  %v3427_v36 = vcombine.low %v118_v24, %v122_v25  ;;  %v135_v16 = vld [vmem:[#allocation2 + $0x190] sm:$0xff] }
  0x40   :  { %574 = vmatpush1.bf16.msra.mxu0 %v3441_v18  ;;  %617 = vmatpush1.bf16.msra.mxu1 %v3443_v19  ;;  %v113_v31 = vld [vmem:[#allocation2 + $0xe0] sm:$0xff]  ;;  %v114_v33 = vld [vmem:[#allocation2 + $0xe8] sm:$0xff]  ;;  %v3456_v15 = vcombine.high %v144_v9, %v148_v10  ;;  %v139_v17 = vld [vmem:[#allocation2 + $0x1b0] sm:$0xff] }
  0x41   :  { %575 = vmatprep.subr.bf16.mxu0 %v3434_v20  ;;  %618 = vmatprep.subr.bf16.mxu1 %v3436_v21  ;;  %v4496_v35 = vld [vmem:[%s4618_s0 + $0x4] ss:$8 sps:$4 sm:$0xff]   ;;  %v3418_v37 = vcombine.high %v109_v30, %v113_v31  ;;  %v3420_v38 = vcombine.high %v110_v32, %v114_v33  ;;  %v3417_v43 = vcombine.low %v109_v30, %v113_v31  ;;  %v4505_v13 = vld [vmem:[%s4618_s0] ss:$8 sps:$4 sm:$0xff]   ;;  %v136_v18 = vld [vmem:[#allocation2 + $0x198] sm:$0xff] }
  0x42   :  { %v101_v39 = vld [vmem:[#allocation2 + $0x80] sm:$0xff]  ;;  %3465 = vmatprep.mubr.msk.bf16.mxu0 %vm567_vm0, %v4496_v35  ;;  %v102_v41 = vld [vmem:[#allocation2 + $0x88] sm:$0xff]  ;;  %3466 = vmatprep.mubr.msk.bf16.mxu1 %vm567_vm0, %v4496_v35  ;;  %v3419_v44 = vcombine.low %v110_v32, %v114_v33  ;;  %v140_v19 = vld [vmem:[#allocation2 + $0x1b8] sm:$0xff]  ;;  %v3453_v20 = vcombine.low %v143_v7, %v147_v8  ;;  %v3455_v21 = vcombine.low %v144_v9, %v148_v10 }
  0x43   :  { %v105_v40 = vld [vmem:[#allocation2 + $0xa0] sm:$0xff]  ;;  %v106_v42 = vld [vmem:[#allocation2 + $0xa8] sm:$0xff]  ;;  %v3446_v22 = vcombine.high %v135_v16, %v139_v17  ;;  %v3448_v23 = vcombine.high %v136_v18, %v140_v19  ;;  %v127_v24 = vld [vmem:[#allocation2 + $0x150] sm:$0xff] }
  0x44   :  { %576 = vmatpush1.bf16.msra.mxu0 %v3433_v26  ;;  %619 = vmatpush1.bf16.msra.mxu1 %v3435_v27  ;;  %v3410_v45 = vcombine.high %v101_v39, %v105_v40  ;;  %v3412_v46 = vcombine.high %v102_v41, %v106_v42  ;;  %v93_v47 = vld [vmem:[#allocation2 + $0x40] sm:$0xff]  ;;  %v94_v49 = vld [vmem:[#allocation2 + $0x48] sm:$0xff]  ;;  %v3409_v51 = vcombine.low %v101_v39, %v105_v40  ;;  %v131_v25 = vld [vmem:[#allocation2 + $0x170] sm:$0xff] }
  0x45   :  { %577 = vmatprep.subr.bf16.mxu0 %v3426_v28  ;;  %620 = vmatprep.subr.bf16.mxu1 %v3428_v29  ;;  %v97_v48 = vld [vmem:[#allocation2 + $0x60] sm:$0xff]  ;;  %v98_v50 = vld [vmem:[#allocation2 + $0x68] sm:$0xff]  ;;  %v3411_v52 = vcombine.low %v102_v41, %v106_v42  ;;  %v128_v26 = vld [vmem:[#allocation2 + $0x158] sm:$0xff]  ;;  %v3445_v28 = vcombine.low %v135_v16, %v139_v17  ;;  %v3447_v29 = vcombine.low %v136_v18, %v140_v19 }
  0x46   :  { %v3402_v53 = vcombine.high %v93_v47, %v97_v48  ;;  %v3404_v54 = vcombine.high %v94_v49, %v98_v50  ;;  %v85_v55 = vld [vmem:[#allocation2] sm:$0xff]  ;;  %v86_v57 = vld [vmem:[#allocation2 + $0x8] sm:$0xff]  ;;  %v3401_v59 = vcombine.low %v93_v47, %v97_v48  ;;  %v3403_v60 = vcombine.low %v94_v49, %v98_v50  ;;  %v132_v27 = vld [vmem:[#allocation2 + $0x178] sm:$0xff] }
  0x47   :  { %v89_v56 = vld [vmem:[#allocation2 + $0x20] sm:$0xff]  ;;  %v90_v58 = vld [vmem:[#allocation2 + $0x28] sm:$0xff]  ;;  %v3438_v30 = vcombine.high %v127_v24, %v131_v25  ;;  %v3440_v31 = vcombine.high %v128_v26, %v132_v27  ;;  %v119_v32 = vld [vmem:[#allocation2 + $0x110] sm:$0xff] }
  0x48   :  { %578 = vmatpush1.bf16.msra.mxu0 %v3425_v34  ;;  %621 = vmatpush1.bf16.msra.mxu1 %v3427_v36  ;;  %v3394_v61 = vcombine.high %v85_v55, %v89_v56  ;;  %v3396_v62 = vcombine.high %v86_v57, %v90_v58  ;;  %v149_v63 = vld [vmem:[#allocation2 + $0x200] sm:$0xff]  ;;  %v150_v1 = vld [vmem:[#allocation2 + $0x208] sm:$0xff]  ;;  %v3393_v3 = vcombine.low %v85_v55, %v89_v56  ;;  %v123_v33 = vld [vmem:[#allocation2 + $0x130] sm:$0xff] }
  0x49   :  { %579 = vmatprep.subr.bf16.mxu0 %v3418_v37  ;;  %622 = vmatprep.subr.bf16.mxu1 %v3420_v38  ;;  %v153_v0 = vld [vmem:[#allocation2 + $0x220] sm:$0xff]  ;;  %v154_v2 = vld [vmem:[#allocation2 + $0x228] sm:$0xff]  ;;  %v3395_v4 = vcombine.low %v86_v57, %v90_v58  ;;  %v120_v34 = vld [vmem:[#allocation2 + $0x118] sm:$0xff]  ;;  %v3437_v37 = vcombine.low %v127_v24, %v131_v25  ;;  %v3439_v38 = vcombine.low %v128_v26, %v132_v27 }
  0x4a   :  { %v3458_v5 = vcombine.high %v149_v63, %v153_v0  ;;  %v3460_v6 = vcombine.high %v150_v1, %v154_v2  ;;  %v3457_v11 = vcombine.low %v149_v63, %v153_v0  ;;  %v3459_v12 = vcombine.low %v150_v1, %v154_v2  ;;  %v124_v36 = vld [vmem:[#allocation2 + $0x138] sm:$0xff]  ;;  %v111_v41 = vld [vmem:[#allocation2 + $0xd0] sm:$0xff] }
  0x4b   :  { %v3430_v39 = vcombine.high %v119_v32, %v123_v33  ;;  %v3432_v40 = vcombine.high %v120_v34, %v124_v36  ;;  %v115_v42 = vld [vmem:[#allocation2 + $0xf0] sm:$0xff]  ;;  %v104_v50 = vld [vmem:[#allocation2 + $0x98] sm:$0xff] }
  0x4c   :  { %580 = vmatpush1.bf16.msra.mxu0 %v3417_v43  ;;  %623 = vmatpush1.bf16.msra.mxu1 %v3419_v44  ;;  %v112_v43 = vld [vmem:[#allocation2 + $0xd8] sm:$0xff]  ;;  %v3422_v47 = vcombine.high %v111_v41, %v115_v42  ;;  %v103_v48 = vld [vmem:[#allocation2 + $0x90] sm:$0xff] }
  0x4d   :  { %581 = vmatprep.subr.bf16.mxu0 %v3410_v45  ;;  %624 = vmatprep.subr.bf16.mxu1 %v3412_v46  ;;  %v116_v44 = vld [vmem:[#allocation2 + $0xf8] sm:$0xff]  ;;  %v3429_v45 = vcombine.low %v119_v32, %v123_v33  ;;  %v3431_v46 = vcombine.low %v120_v34, %v124_v36  ;;  %v107_v49 = vld [vmem:[#allocation2 + $0xb0] sm:$0xff] }
  0x4e   :  { %v95_v56 = vld [vmem:[#allocation2 + $0x50] sm:$0xff]  ;;  %v96_v58 = vld [vmem:[#allocation2 + $0x58] sm:$0xff] }
  0x4f   :  { %v99_v57 = vld [vmem:[#allocation2 + $0x70] sm:$0xff]  ;;  %v88_v2 = vld [vmem:[#allocation2 + $0x18] sm:$0xff] }
  0x50   :  { %582 = vmatpush1.bf16.msra.mxu0 %v3409_v51  ;;  %625 = vmatpush1.bf16.msra.mxu1 %v3411_v52  ;;  %v108_v51 = vld [vmem:[#allocation2 + $0xb8] sm:$0xff]  ;;  %v3421_v52 = vcombine.low %v111_v41, %v115_v42  ;;  %v87_v0 = vld [vmem:[#allocation2 + $0x10] sm:$0xff] }
  0x51   :  { %583 = vmatprep.subr.bf16.mxu0 %v3402_v53  ;;  %626 = vmatprep.subr.bf16.mxu1 %v3404_v54  ;;  %v3423_v53 = vcombine.low %v112_v43, %v116_v44  ;;  %v3414_v54 = vcombine.high %v103_v48, %v107_v49  ;;  %v3416_v55 = vcombine.high %v104_v50, %v108_v51  ;;  %v91_v1 = vld [vmem:[#allocation2 + $0x30] sm:$0xff]  ;;  %v152_v9 = vld [vmem:[#allocation2 + $0x218] sm:$0xff] }
  0x52   :  { %v3398_v8 = vcombine.high %v87_v0, %v91_v1  ;;  %v156_v10 = vld [vmem:[#allocation2 + $0x238] sm:$0xff]  ;;  %v3854_v17 = vld [vmem:[#allocation4 + $0xe4] ss:$16 sps:$4 sm:$0xff]   ;;  %v3858_v25 = vld [vmem:[#allocation4 + $0xc0] ss:$16 sps:$4 sm:$0xff]  }
  0x53   :  { %v3464_v16 = vcombine.high %v152_v9, %v156_v10  ;;  %v3857_v19 = vld [vmem:[#allocation4 + $0x2e4] ss:$16 sps:$4 sm:$0xff]   ;;  %v3861_v26 = vld [vmem:[#allocation4 + $0x2c0] ss:$16 sps:$4 sm:$0xff]  }
  0x54   :  { %584 = vmatpush1.bf16.msra.mxu0 %v3401_v59  ;;  %627 = vmatpush1.bf16.msra.mxu1 %v3403_v60  ;;  %v100_v59 = vld [vmem:[#allocation2 + $0x78] sm:$0xff]  ;;  %v3413_v60 = vcombine.low %v103_v48, %v107_v49  ;;  %v3863_v24 = vld [vmem:[#allocation4 + $0x2c4] ss:$16 sps:$4 sm:$0xff]   ;;  %v3870_v33 = vld [vmem:[#allocation4 + $0x80] ss:$16 sps:$4 sm:$0xff]  }
  0x55   :  { %585 = vmatprep.subr.bf16.mxu0 %v3394_v61  ;;  %628 = vmatprep.subr.bf16.mxu1 %v3396_v62  ;;  %v3415_v61 = vcombine.low %v104_v50, %v108_v51  ;;  %v3406_v62 = vcombine.high %v95_v56, %v99_v57  ;;  %v3408_v63 = vcombine.high %v96_v58, %v100_v59  ;;  %v3866_v27 = vld [vmem:[#allocation4 + $0xa4] ss:$16 sps:$4 sm:$0xff]   ;;  %v3873_v34 = vld [vmem:[#allocation4 + $0x280] ss:$16 sps:$4 sm:$0xff]  }
  0x56   :  { %v3407_v7 = vcombine.low %v96_v58, %v100_v59  ;;  %v3875_v32 = vld [vmem:[#allocation4 + $0x284] ss:$16 sps:$4 sm:$0xff]   ;;  %v3882_v41 = vld [vmem:[#allocation4 + $0x40] ss:$16 sps:$4 sm:$0xff]  }
  0x57   :  { %v3878_v36 = vld [vmem:[#allocation4 + $0x64] ss:$16 sps:$4 sm:$0xff]   ;;  %v3885_v42 = vld [vmem:[#allocation4 + $0x240] ss:$16 sps:$4 sm:$0xff]  }
  0x58   :  { %586 = vmatpush1.bf16.msra.mxu0 %v3393_v3  ;;  %629 = vmatpush1.bf16.msra.mxu1 %v3395_v4  ;;  %v92_v3 = vld [vmem:[#allocation2 + $0x38] sm:$0xff]  ;;  %v3405_v4 = vcombine.low %v95_v56, %v99_v57  ;;  %v3894_v48 = vld [vmem:[#allocation4] ss:$16 sps:$4 sm:$0xff]   ;;  %v3902_v50 = vld [vmem:[#allocation4 + $0x1e4] ss:$16 sps:$4 sm:$0xff]  }
  0x59   :  { %601 = vmatprep.subr.bf16.mxu0 %v3458_v5  ;;  %644 = vmatprep.subr.bf16.mxu1 %v3460_v6  ;;  %v151_v5 = vld [vmem:[#allocation2 + $0x210] sm:$0xff] }
  0x5a   :  { %v155_v6 = vld [vmem:[#allocation2 + $0x230] sm:$0xff] }
  0x5b   :  { %v3461_v18 = vcombine.low %v151_v5, %v155_v6  ;;  %v3897_v49 = vld [vmem:[#allocation4 + $0x200] ss:$16 sps:$4 sm:$0xff]   ;;  %v3905_v51 = vld [vmem:[#allocation4 + $0x3e4] ss:$16 sps:$4 sm:$0xff]  }
  0x5c   :  { %602 = vmatpush2.bf16.msra.mxu0 %v3457_v11  ;;  %645 = vmatpush2.bf16.msra.mxu1 %v3459_v12  ;;  %v3400_v11 = vcombine.high %v88_v2, %v92_v3  ;;  %v3397_v12 = vcombine.low %v87_v0, %v91_v1  ;;  %v3911_v56 = vld [vmem:[#allocation4 + $0x3c4] ss:$16 sps:$4 sm:$0xff]   ;;  %v3909_v57 = vld [vmem:[#allocation4 + $0x3c0] ss:$16 sps:$4 sm:$0xff]  }
  0x5d   :  { %657 = vmatprep.subr.bf16.mxu0 %v3454_v14  ;;  %700 = vmatprep.subr.bf16.mxu1 %v3456_v15  ;;  %v3399_v14 = vcombine.low %v88_v2, %v92_v3  ;;  %v3462_v15 = vcombine.high %v151_v5, %v155_v6  ;;  %v3914_v58 = vld [vmem:[#allocation4 + $0x1a4] ss:$16 sps:$4 sm:$0xff]   ;;  %v3912_v59 = vld [vmem:[#allocation4 + $0x1a0] ss:$16 sps:$4 sm:$0xff]  }
  0x5e   :  { %v3923_v0 = vld [vmem:[#allocation4 + $0x384] ss:$16 sps:$4 sm:$0xff]   ;;  %v3921_v1 = vld [vmem:[#allocation4 + $0x380] ss:$16 sps:$4 sm:$0xff]  }
  0x5f   :  { %604 = vmatmul.mubr.bf16.vlgmr.msra.gmra.mxu0 %v4505_v13  ;;  %647 = vmatmul.mubr.bf16.vlgmr.msra.gmra.mxu1 %v4505_v13  ;;  %v3926_v2 = vld [vmem:[#allocation4 + $0x164] ss:$16 sps:$4 sm:$0xff]   ;;  %v3924_v3 = vld [vmem:[#allocation4 + $0x160] ss:$16 sps:$4 sm:$0xff]  }
  0x60   :  { %658 = vmatpush1.bf16.msra.mxu0 %v3453_v20  ;;  %701 = vmatpush1.bf16.msra.mxu1 %v3455_v21  ;;  %v3463_v20 = vcombine.low %v152_v9, %v156_v10  ;;  %v3852_v21 = vld [vmem:[#allocation4 + $0xe0] ss:$16 sps:$4 sm:$0xff]   ;;  %v3932_v6 = vld [vmem:[#allocation4 + $0x144] ss:$16 sps:$4 sm:$0xff]  }
  0x61   :  { %659 = vmatprep.subr.bf16.mxu0 %v3446_v22  ;;  %702 = vmatprep.subr.bf16.mxu1 %v3448_v23  ;;  %v3855_v22 = vld [vmem:[#allocation4 + $0x2e0] ss:$16 sps:$4 sm:$0xff]   ;;  %v3860_v23 = vld [vmem:[#allocation4 + $0xc4] ss:$16 sps:$4 sm:$0xff]  }
  0x62   :  { %3467 = vmatprep.mubr.msk.bf16.mxu0 %vm567_vm0, %v4496_v35  ;;  %3468 = vmatprep.mubr.msk.bf16.mxu1 %vm567_vm0, %v4496_v35  ;;  %v3424_v35 = vcombine.high %v112_v43, %v116_v44  ;;  %v3890_v43 = vld [vmem:[#allocation4 + $0x24] ss:$16 sps:$4 sm:$0xff]   ;;  %v3927_v5 = vld [vmem:[#allocation4 + $0x360] ss:$16 sps:$4 sm:$0xff]  }
  0x63   :  { %v3893_v44 = vld [vmem:[#allocation4 + $0x224] ss:$16 sps:$4 sm:$0xff]   ;;  %v3933_v9 = vld [vmem:[#allocation4 + $0x340] ss:$16 sps:$4 sm:$0xff]  }
  0x64   :  { %660 = vmatpush1.bf16.msra.mxu0 %v3445_v28  ;;  %703 = vmatpush1.bf16.msra.mxu1 %v3447_v29  ;;  %v3869_v28 = vld [vmem:[#allocation4 + $0x2a4] ss:$16 sps:$4 sm:$0xff]   ;;  %v3864_v29 = vld [vmem:[#allocation4 + $0xa0] ss:$16 sps:$4 sm:$0xff]  }
  0x65   :  { %661 = vmatprep.subr.bf16.mxu0 %v3438_v30  ;;  %704 = vmatprep.subr.bf16.mxu1 %v3440_v31  ;;  %v3867_v30 = vld [vmem:[#allocation4 + $0x2a0] ss:$16 sps:$4 sm:$0xff]   ;;  %v3872_v31 = vld [vmem:[#allocation4 + $0x84] ss:$16 sps:$4 sm:$0xff]  }
  0x66   :  { %v3938_v10 = vld [vmem:[#allocation4 + $0x124] ss:$16 sps:$4 sm:$0xff]  }
  0x68   :  { %662 = vmatpush1.bf16.msra.mxu0 %v3437_v37  ;;  %705 = vmatpush1.bf16.msra.mxu1 %v3439_v38  ;;  %v3881_v37 = vld [vmem:[#allocation4 + $0x264] ss:$16 sps:$4 sm:$0xff]   ;;  %v3879_v38 = vld [vmem:[#allocation4 + $0x260] ss:$16 sps:$4 sm:$0xff]  }
  0x69   :  { %663 = vmatprep.subr.bf16.mxu0 %v3430_v39  ;;  %706 = vmatprep.subr.bf16.mxu1 %v3432_v40  ;;  %v3884_v39 = vld [vmem:[#allocation4 + $0x44] ss:$16 sps:$4 sm:$0xff]  }
  0x6a   :  { %v3887_v40 = vld [vmem:[#allocation4 + $0x244] ss:$16 sps:$4 sm:$0xff]  }
  0x6c   :  { %664 = vmatpush1.bf16.msra.mxu0 %v3429_v45  ;;  %707 = vmatpush1.bf16.msra.mxu1 %v3431_v46  ;;  %v3888_v45 = vld [vmem:[#allocation4 + $0x20] ss:$16 sps:$4 sm:$0xff]  }
  0x6d   :  { %665 = vmatprep.subr.bf16.mxu0 %v3422_v47  ;;  %708 = vmatprep.subr.bf16.mxu1 %v3424_v35  ;;  %v3891_v46 = vld [vmem:[#allocation4 + $0x220] ss:$16 sps:$4 sm:$0xff]   ;;  %v3896_v47 = vld [vmem:[#allocation4 + $0x4] ss:$16 sps:$4 sm:$0xff]  }
  0x6e   :  { %v3899_v35 = vld [vmem:[#allocation4 + $0x204] ss:$16 sps:$4 sm:$0xff]  }
  0x70   :  { %666 = vmatpush1.bf16.msra.mxu0 %v3421_v52  ;;  %709 = vmatpush1.bf16.msra.mxu1 %v3423_v53  ;;  %v3900_v52 = vld [vmem:[#allocation4 + $0x1e0] ss:$16 sps:$4 sm:$0xff]  }
  0x71   :  { %667 = vmatprep.subr.bf16.mxu0 %v3414_v54  ;;  %710 = vmatprep.subr.bf16.mxu1 %v3416_v55  ;;  %v3903_v53 = vld [vmem:[#allocation4 + $0x3e0] ss:$16 sps:$4 sm:$0xff]   ;;  %v3908_v54 = vld [vmem:[#allocation4 + $0x1c4] ss:$16 sps:$4 sm:$0xff]  }
  0x72   :  { %v3906_v55 = vld [vmem:[#allocation4 + $0x1c0] ss:$16 sps:$4 sm:$0xff]  }
  0x74   :  { %668 = vmatpush1.bf16.msra.mxu0 %v3413_v60  ;;  %711 = vmatpush1.bf16.msra.mxu1 %v3415_v61  ;;  %v3917_v60 = vld [vmem:[#allocation4 + $0x3a4] ss:$16 sps:$4 sm:$0xff]   ;;  %v3915_v61 = vld [vmem:[#allocation4 + $0x3a0] ss:$16 sps:$4 sm:$0xff]  }
  0x75   :  { %669 = vmatprep.subr.bf16.mxu0 %v3406_v62  ;;  %712 = vmatprep.subr.bf16.mxu1 %v3408_v63  ;;  %v3920_v62 = vld [vmem:[#allocation4 + $0x184] ss:$16 sps:$4 sm:$0xff]   ;;  %v3918_v63 = vld [vmem:[#allocation4 + $0x180] ss:$16 sps:$4 sm:$0xff]  }
  0x78   :  { %670 = vmatpush1.bf16.msra.mxu0 %v3405_v4  ;;  %713 = vmatpush1.bf16.msra.mxu1 %v3407_v7  ;;  %v3929_v4 = vld [vmem:[#allocation4 + $0x364] ss:$16 sps:$4 sm:$0xff]  }
  0x79   :  { %671 = vmatprep.subr.bf16.mxu0 %v3398_v8  ;;  %714 = vmatprep.subr.bf16.mxu1 %v3400_v11  ;;  %v3935_v7 = vld [vmem:[#allocation4 + $0x344] ss:$16 sps:$4 sm:$0xff]   ;;  %v3930_v8 = vld [vmem:[#allocation4 + $0x140] ss:$16 sps:$4 sm:$0xff]  }
  0x7a   :  { %v3941_v11 = vld [vmem:[#allocation4 + $0x324] ss:$16 sps:$4 sm:$0xff]  }
  0x7c   :  { %672 = vmatpush1.bf16.msra.mxu0 %v3397_v12  ;;  %715 = vmatpush1.bf16.msra.mxu1 %v3399_v14  ;;  %v3936_v12 = vld [vmem:[#allocation4 + $0x120] ss:$16 sps:$4 sm:$0xff]  }
  0x7d   :  { %687 = vmatprep.subr.bf16.mxu0 %v3462_v15  ;;  %730 = vmatprep.subr.bf16.mxu1 %v3464_v16  ;;  %v3939_v14 = vld [vmem:[#allocation4 + $0x320] ss:$16 sps:$4 sm:$0xff]   ;;  %v3944_v15 = vld [vmem:[#allocation4 + $0x104] ss:$16 sps:$4 sm:$0xff]  }
  0x7e   :  { %v3947_v16 = vld [vmem:[#allocation4 + $0x304] ss:$16 sps:$4 sm:$0xff]  }
  0x80   :  { %688 = vmatpush2.bf16.msra.mxu0 %v3461_v18  ;;  %731 = vmatpush2.bf16.msra.mxu1 %v3463_v20  ;;  %v3945_v18 = vld [vmem:[#allocation4 + $0x300] ss:$16 sps:$4 sm:$0xff]   ;;  %v3953_v20 = vld [vmem:[#allocation4 + $0x6e4] ss:$16 sps:$4 sm:$0xff]  }
  0x81   :  { %2340 = vmatprep.subr.bf16.mxu0 %v3854_v17  ;;  %2383 = vmatprep.subr.bf16.mxu1 %v3857_v19  ;;  %v3942_v17 = vld [vmem:[#allocation4 + $0x100] ss:$16 sps:$4 sm:$0xff]   ;;  %v3950_v19 = vld [vmem:[#allocation4 + $0x4e4] ss:$16 sps:$4 sm:$0xff]  }
  0x83   :  { %690 = vmatmul.mubr.bf16.vlgmr.msra.gmra.mxu0 %v4505_v13  ;;  %733 = vmatmul.mubr.bf16.vlgmr.msra.gmra.mxu1 %v4505_v13  ;;  %v3876_v13 = vld [vmem:[#allocation4 + $0x60] ss:$16 sps:$4 sm:$0xff]  }
  0x84   :  { %2341 = vmatpush1.bf16.msra.mxu0 %v3852_v21  ;;  %2384 = vmatpush1.bf16.msra.mxu1 %v3855_v22  ;;  %v158_v21 = vlaneseq }
  0x85   :  { %2342 = vmatprep.subr.bf16.mxu0 %v3860_v23  ;;  %2385 = vmatprep.subr.bf16.mxu1 %v3863_v24 }
  0x86   :  { %v4515_v22 = vshrl.u32 %v158_v21, 7  ;;  %v3975_v21 = vld [vmem:[#allocation4 + $0x660] ss:$16 sps:$4 sm:$0xff]  }
  0x88   :  { %2343 = vmatpush1.bf16.msra.mxu0 %v3858_v25  ;;  %2386 = vmatpush1.bf16.msra.mxu1 %v3861_v26  ;;  %v4518_v23 = vsub.s32 1, %v4515_v22  ;;  %v4521_v24 = vsub.s32 0, %v4515_v22  ;;  %v172_v25 = vsub.s32 3, %v4515_v22  ;;  %v4527_v26 = vld [vmem:[%s4623_s5] sm:$0xff] }
  0x89   :  { %2344 = vmatprep.subr.bf16.mxu0 %v3866_v27  ;;  %2387 = vmatprep.subr.bf16.mxu1 %v3869_v28  ;;  %v168_v27 = vsub.s32 2, %v4515_v22 }
  0x8a   :  { %v165_v28 = vrot.slane %v4527_v26, %v4518_v23 }
  0x8c   :  { %2345 = vmatpush1.bf16.msra.mxu0 %v3864_v29  ;;  %2388 = vmatpush1.bf16.msra.mxu1 %v3867_v30  ;;  %v161_v29 = vrot.slane %v4527_v26, %v4521_v24 }
  0x8d   :  { %2346 = vmatprep.subr.bf16.mxu0 %v3872_v31  ;;  %2389 = vmatprep.subr.bf16.mxu1 %v3875_v32  ;;  %v173_v31 = vrot.slane %v4527_v26, %v172_v25  ;;  %v169_v32 = vrot.slane %v4527_v26, %v168_v27 }
  0x90   :  { %2347 = vmatpush1.bf16.msra.mxu0 %v3870_v33  ;;  %2390 = vmatpush1.bf16.msra.mxu1 %v3873_v34 }
  0x91   :  { %2348 = vmatprep.subr.bf16.mxu0 %v3878_v36  ;;  %2391 = vmatprep.subr.bf16.mxu1 %v3881_v37 }
  0x94   :  { %2349 = vmatpush1.bf16.msra.mxu0 %v3876_v13  ;;  %2392 = vmatpush1.bf16.msra.mxu1 %v3879_v38 }
  0x95   :  { %2350 = vmatprep.subr.bf16.mxu0 %v3884_v39  ;;  %2393 = vmatprep.subr.bf16.mxu1 %v3887_v40 }
  0x98   :  { %2351 = vmatpush1.bf16.msra.mxu0 %v3882_v41  ;;  %2394 = vmatpush1.bf16.msra.mxu1 %v3885_v42 }
  0x99   :  { %2352 = vmatprep.subr.bf16.mxu0 %v3890_v43  ;;  %2395 = vmatprep.subr.bf16.mxu1 %v3893_v44 }
  0x9c   :  { %2353 = vmatpush1.bf16.msra.mxu0 %v3888_v45  ;;  %2396 = vmatpush1.bf16.msra.mxu1 %v3891_v46 }
  0x9d   :  { %2354 = vmatprep.subr.bf16.mxu0 %v3896_v47  ;;  %2397 = vmatprep.subr.bf16.mxu1 %v3899_v35 }
  0xa0   :  { %2355 = vmatpush1.bf16.msra.mxu0 %v3894_v48  ;;  %2398 = vmatpush1.bf16.msra.mxu1 %v3897_v49 }
  0xa1   :  { %2356 = vmatprep.subr.bf16.mxu0 %v3902_v50  ;;  %2399 = vmatprep.subr.bf16.mxu1 %v3905_v51 }
  0xa4   :  { %2357 = vmatpush2.bf16.msra.mxu0 %v3900_v52  ;;  %2400 = vmatpush2.bf16.msra.mxu1 %v3903_v53 }
  0xa5   :  { %2358 = vmatprep.subr.bf16.mxu0 %v3908_v54  ;;  %2401 = vmatprep.subr.bf16.mxu1 %v3911_v56 }
  0xa8   :  { %2359 = vmatpush2.bf16.msra.mxu0 %v3906_v55  ;;  %2402 = vmatpush2.bf16.msra.mxu1 %v3909_v57 }
  0xa9   :  { %2360 = vmatprep.subr.bf16.mxu0 %v3914_v58  ;;  %2403 = vmatprep.subr.bf16.mxu1 %v3917_v60 }
  0xac   :  { %2361 = vmatpush2.bf16.msra.mxu0 %v3912_v59  ;;  %2404 = vmatpush2.bf16.msra.mxu1 %v3915_v61 }
  0xad   :  { %2362 = vmatprep.subr.bf16.mxu0 %v3920_v62  ;;  %2405 = vmatprep.subr.bf16.mxu1 %v3923_v0  ;;  %v3948_v0 = vld [vmem:[#allocation4 + $0x4e0] ss:$16 sps:$4 sm:$0xff]  }
  0xb0   :  { %2363 = vmatpush2.bf16.msra.mxu0 %v3918_v63  ;;  %2406 = vmatpush2.bf16.msra.mxu1 %v3921_v1 }
  0xb1   :  { %2364 = vmatprep.subr.bf16.mxu0 %v3926_v2  ;;  %2407 = vmatprep.subr.bf16.mxu1 %v3929_v4  ;;  %v3956_v4 = vld [vmem:[#allocation4 + $0x4c4] ss:$16 sps:$4 sm:$0xff]  }
  0xb4   :  { %2365 = vmatpush2.bf16.msra.mxu0 %v3924_v3  ;;  %2408 = vmatpush2.bf16.msra.mxu1 %v3927_v5  ;;  %v3951_v3 = vld [vmem:[#allocation4 + $0x6e0] ss:$16 sps:$4 sm:$0xff]  }
  0xb5   :  { %2366 = vmatprep.subr.bf16.mxu0 %v3932_v6  ;;  %2409 = vmatprep.subr.bf16.mxu1 %v3935_v7  ;;  %v3959_v6 = vld [vmem:[#allocation4 + $0x6c4] ss:$16 sps:$4 sm:$0xff]   ;;  %v3954_v7 = vld [vmem:[#allocation4 + $0x4c0] ss:$16 sps:$4 sm:$0xff]  }
  0xb8   :  { %2367 = vmatpush2.bf16.msra.mxu0 %v3930_v8  ;;  %2410 = vmatpush2.bf16.msra.mxu1 %v3933_v9  ;;  %v3957_v8 = vld [vmem:[#allocation4 + $0x6c0] ss:$16 sps:$4 sm:$0xff]   ;;  %v3962_v9 = vld [vmem:[#allocation4 + $0x4a4] ss:$16 sps:$4 sm:$0xff]  }
  0xb9   :  { %2368 = vmatprep.subr.bf16.mxu0 %v3938_v10  ;;  %2411 = vmatprep.subr.bf16.mxu1 %v3941_v11  ;;  %v3965_v10 = vld [vmem:[#allocation4 + $0x6a4] ss:$16 sps:$4 sm:$0xff]   ;;  %v3960_v11 = vld [vmem:[#allocation4 + $0x4a0] ss:$16 sps:$4 sm:$0xff]  }
  0xbc   :  { %2369 = vmatpush2.bf16.msra.mxu0 %v3936_v12  ;;  %2412 = vmatpush2.bf16.msra.mxu1 %v3939_v14  ;;  %v3963_v12 = vld [vmem:[#allocation4 + $0x6a0] ss:$16 sps:$4 sm:$0xff]   ;;  %v3968_v14 = vld [vmem:[#allocation4 + $0x484] ss:$16 sps:$4 sm:$0xff]  }
  0xbd   :  { %2370 = vmatprep.subr.bf16.mxu0 %v3944_v15  ;;  %2413 = vmatprep.subr.bf16.mxu1 %v3947_v16  ;;  %v3971_v15 = vld [vmem:[#allocation4 + $0x684] ss:$16 sps:$4 sm:$0xff]   ;;  %v3966_v16 = vld [vmem:[#allocation4 + $0x480] ss:$16 sps:$4 sm:$0xff]  }
  0xc0   :  { %2371 = vmatpush2.bf16.msra.mxu0 %v3942_v17  ;;  %2414 = vmatpush2.bf16.msra.mxu1 %v3945_v18  ;;  %v3969_v17 = vld [vmem:[#allocation4 + $0x680] ss:$16 sps:$4 sm:$0xff]   ;;  %v3974_v18 = vld [vmem:[#allocation4 + $0x464] ss:$16 sps:$4 sm:$0xff]  }
  0xc1   :  { %2426 = vmatprep.subr.bf16.mxu0 %v3950_v19  ;;  %2469 = vmatprep.subr.bf16.mxu1 %v3953_v20  ;;  %v3977_v19 = vld [vmem:[#allocation4 + $0x664] ss:$16 sps:$4 sm:$0xff]   ;;  %v3972_v20 = vld [vmem:[#allocation4 + $0x460] ss:$16 sps:$4 sm:$0xff]  }
 0x11f   :  { %v605_v30 = vpop.f32.mrf.mxu0  ;;  %v648_v33 = vpop.f32.mrf.mxu1 }
 0x120   :  { %v606_v13 = vadd.f32 %v605_v30, %v161_v29  ;;  %v649_v40 = vadd.f32 %v648_v33, %v169_v32  ;;  %v180_v30 = vsub.s32 5, %v4515_v22  ;;  %v3981_v33 = vld [vmem:[#allocation4 + $0x640] ss:$16 sps:$4 sm:$0xff]  }
 0x121   :  { %v607_v34 = vpop.f32.mrf.mxu0  ;;  %v650_v37 = vpop.f32.mrf.mxu1 }
 0x122   :  { %v608_v36 = vadd.f32 %v607_v34, %v165_v28  ;;  %v651_v38 = vadd.f32 %v650_v37, %v173_v31  ;;  %v743_v48 = vmul.f32 0.1, %v606_v13  ;;  %v745_v52 = vmul.f32 0.1, %v649_v40  ;;  %v3986_v34 = vld [vmem:[#allocation4 + $0x424] ss:$16 sps:$4 sm:$0xff]  }
 0x123   :  { %v609_v39 = vpop.f32.mrf.mxu0  ;;  %v652_v42 = vpop.f32.mrf.mxu1  ;;  %v181_v37 = vrot.slane %v4527_v26, %v180_v30  ;;  %v184_v30 = vsub.s32 6, %v4515_v22 }
 0x124   :  { %v610_v41 = vadd.f32 %v609_v39, %v161_v29  ;;  %v653_v43 = vadd.f32 %v652_v42, %v169_v32  ;;  %v744_v45 = vmul.f32 0.1, %v608_v36  ;;  %v746_v49 = vmul.f32 0.1, %v651_v38  ;;  %v3983_v29 = vld [vmem:[#allocation4 + $0x644] ss:$16 sps:$4 sm:$0xff]  }
 0x125   :  { %v611_v44 = vpop.f32.mrf.mxu0  ;;  %v654_v35 = vpop.f32.mrf.mxu1  ;;  %v759_v59 = vmax.f32 %v606_v13, %v743_v48  ;;  %v761_v62 = vmax.f32 %v649_v40, %v745_v52  ;;  %v3978_v32 = vld [vmem:[#allocation4 + $0x440] ss:$16 sps:$4 sm:$0xff]   ;;  %v3992_v42 = vld [vmem:[#allocation4 + $0x404] ss:$16 sps:$4 sm:$0xff]  }
 0x126   :  { %v751_v46 = vmul.f32 0.1, %v610_v41  ;;  %v612_v47 = vadd.f32 %v611_v44, %v165_v28  ;;  %v753_v50 = vmul.f32 0.1, %v653_v43  ;;  %v655_v51 = vadd.f32 %v654_v35, %v173_v31  ;;  %v3980_v28 = vld [vmem:[#allocation4 + $0x444] ss:$16 sps:$4 sm:$0xff]  }
 0x127   :  { %v760_v56 = vmax.f32 %v608_v36, %v744_v45  ;;  %v762_v60 = vmax.f32 %v651_v38, %v746_v49  ;;  %v188_v31 = vsub.s32 7, %v4515_v22  ;;  %v3989_v36 = vld [vmem:[#allocation4 + $0x624] ss:$16 sps:$4 sm:$0xff]   ;;  %v3984_v39 = vld [vmem:[#allocation4 + $0x420] ss:$16 sps:$4 sm:$0xff]  }
 0x128   :  { %v752_v53 = vmul.f32 0.1, %v612_v47  ;;  %v767_v54 = vmax.f32 %v610_v41, %v751_v46  ;;  %v754_v55 = vmul.f32 0.1, %v655_v51  ;;  %v769_v57 = vmax.f32 %v653_v43, %v753_v50  ;;  %v3987_v41 = vld [vmem:[#allocation4 + $0x620] ss:$16 sps:$4 sm:$0xff]  }
 0x129   :  { %v189_v38 = vrot.slane %v4527_v26, %v188_v31  ;;  %v3995_v44 = vld [vmem:[#allocation4 + $0x604] ss:$16 sps:$4 sm:$0xff]   ;;  %v3990_v48 = vld [vmem:[#allocation4 + $0x400] ss:$16 sps:$4 sm:$0xff]  }
 0x12a   :  { %v768_v58 = vmax.f32 %v612_v47, %v752_v53  ;;  %v770_v61 = vmax.f32 %v655_v51, %v754_v55  ;;  %v4542_v1 = vpack.c.bf16 %v767_v54, %v759_v59  ;;  %v4546_v5 = vpack.c.bf16 %v769_v57, %v761_v62  ;;  %v3993_v51 = vld [vmem:[#allocation4 + $0x600] ss:$16 sps:$4 sm:$0xff]   ;;  %v3998_v52 = vld [vmem:[#allocation4 + $0x5e4] ss:$16 sps:$4 sm:$0xff]  }
 0x12b   :  { %v4001_v55 = vld [vmem:[#allocation4 + $0x7e4] ss:$16 sps:$4 sm:$0xff]   ;;  %v3996_v59 = vld [vmem:[#allocation4 + $0x5e0] ss:$16 sps:$4 sm:$0xff]  }
 0x12c   :  { %v4540_v63 = vpack.c.bf16 %v768_v58, %v760_v56  ;;  %v4544_v2 = vpack.c.bf16 %v770_v61, %v762_v60  ;;  %v3999_v62 = vld [vmem:[#allocation4 + $0x7e0] ss:$16 sps:$4 sm:$0xff]   ;;  %v4025_v31 = vld [vmem:[#allocation4 + $0x764] ss:$16 sps:$4 sm:$0xff]  }
 0x12e   :  { %2372 = vmatprep.mubr.bf16.mxu0 %v4540_v63  ;;  %2415 = vmatprep.mubr.bf16.mxu1 %v4544_v2 }
 0x12f   :  { %2373 = vmatmul.mubr.bf16.vlgmr.msra.gmra.mxu0 %v4542_v1  ;;  %2416 = vmatmul.mubr.bf16.vlgmr.msra.gmra.mxu1 %v4546_v5 }
 0x130   :  { %2427 = vmatpush1.bf16.msra.mxu0 %v3948_v0  ;;  %2470 = vmatpush1.bf16.msra.mxu1 %v3951_v3  ;;  %v4004_v0 = vld [vmem:[#allocation4 + $0x5c4] ss:$16 sps:$4 sm:$0xff]  }
 0x131   :  { %2428 = vmatprep.subr.bf16.mxu0 %v3956_v4  ;;  %2471 = vmatprep.subr.bf16.mxu1 %v3959_v6  ;;  %v4007_v6 = vld [vmem:[#allocation4 + $0x7c4] ss:$16 sps:$4 sm:$0xff]  }
 0x134   :  { %2429 = vmatpush1.bf16.msra.mxu0 %v3954_v7  ;;  %2472 = vmatpush1.bf16.msra.mxu1 %v3957_v8 }
 0x135   :  { %2430 = vmatprep.subr.bf16.mxu0 %v3962_v9  ;;  %2473 = vmatprep.subr.bf16.mxu1 %v3965_v10  ;;  %v4002_v9 = vld [vmem:[#allocation4 + $0x5c0] ss:$16 sps:$4 sm:$0xff]  }
 0x138   :  { %2431 = vmatpush1.bf16.msra.mxu0 %v3960_v11  ;;  %2474 = vmatpush1.bf16.msra.mxu1 %v3963_v12  ;;  %v4005_v11 = vld [vmem:[#allocation4 + $0x7c0] ss:$16 sps:$4 sm:$0xff]   ;;  %v4010_v12 = vld [vmem:[#allocation4 + $0x5a4] ss:$16 sps:$4 sm:$0xff]  }
 0x139   :  { %2432 = vmatprep.subr.bf16.mxu0 %v3968_v14  ;;  %2475 = vmatprep.subr.bf16.mxu1 %v3971_v15  ;;  %v4013_v15 = vld [vmem:[#allocation4 + $0x7a4] ss:$16 sps:$4 sm:$0xff]  }
 0x13c   :  { %2433 = vmatpush1.bf16.msra.mxu0 %v3966_v16  ;;  %2476 = vmatpush1.bf16.msra.mxu1 %v3969_v17  ;;  %v4008_v16 = vld [vmem:[#allocation4 + $0x5a0] ss:$16 sps:$4 sm:$0xff]  }
 0x13d   :  { %2434 = vmatprep.subr.bf16.mxu0 %v3974_v18  ;;  %2477 = vmatprep.subr.bf16.mxu1 %v3977_v19  ;;  %v4011_v17 = vld [vmem:[#allocation4 + $0x7a0] ss:$16 sps:$4 sm:$0xff]   ;;  %v4016_v18 = vld [vmem:[#allocation4 + $0x584] ss:$16 sps:$4 sm:$0xff]  }
 0x13e   :  { %v4019_v19 = vld [vmem:[#allocation4 + $0x784] ss:$16 sps:$4 sm:$0xff]  }
 0x140   :  { %2435 = vmatpush1.bf16.msra.mxu0 %v3972_v20  ;;  %2478 = vmatpush1.bf16.msra.mxu1 %v3975_v21  ;;  %v4014_v20 = vld [vmem:[#allocation4 + $0x580] ss:$16 sps:$4 sm:$0xff]   ;;  %v176_v21 = vsub.s32 4, %v4515_v22 }
 0x141   :  { %2436 = vmatprep.subr.bf16.mxu0 %v3980_v28  ;;  %2479 = vmatprep.subr.bf16.mxu1 %v3983_v29  ;;  %v4017_v28 = vld [vmem:[#allocation4 + $0x780] ss:$16 sps:$4 sm:$0xff]   ;;  %v4022_v29 = vld [vmem:[#allocation4 + $0x564] ss:$16 sps:$4 sm:$0xff]  }
 0x143   :  { %v4555_v13 = vpop.f32.mrf.mxu0  ;;  %v4558_v40 = vpop.f32.mrf.mxu1 }
 0x144   :  { %2437 = vmatpush1.bf16.msra.mxu0 %v3978_v32  ;;  %2480 = vmatpush1.bf16.msra.mxu1 %v3981_v33  ;;  %v4020_v32 = vld [vmem:[#allocation4 + $0x560] ss:$16 sps:$4 sm:$0xff]   ;;  %v177_v33 = vrot.slane %v4527_v26, %v176_v21  ;;  %v4076_v21 = vld [vmem:[#allocation4 + $0x4c] ss:$16 sps:$4 sm:$0xff]  }
 0x145   :  { %2438 = vmatprep.subr.bf16.mxu0 %v3986_v34  ;;  %v693_v43 = vpop.f32.mrf.mxu0  ;;  %2481 = vmatprep.subr.bf16.mxu1 %v3989_v36  ;;  %v736_v46 = vpop.f32.mrf.mxu1  ;;  %v4023_v34 = vld [vmem:[#allocation4 + $0x760] ss:$16 sps:$4 sm:$0xff]   ;;  %v4028_v36 = vld [vmem:[#allocation4 + $0x544] ss:$16 sps:$4 sm:$0xff]  }
 0x146   :  { %v694_v45 = vadd.f32 %v693_v43, %v181_v37  ;;  %v737_v35 = vadd.f32 %v736_v46, %v189_v38  ;;  %v4029_v43 = vld [vmem:[#allocation4 + $0x740] ss:$16 sps:$4 sm:$0xff]  }
 0x147   :  { %v4560_v47 = vpop.f32.mrf.mxu0  ;;  %v4562_v50 = vpop.f32.mrf.mxu1 }
 0x148   :  { %2439 = vmatpush1.bf16.msra.mxu0 %v3984_v39  ;;  %v748_v49 = vmul.f32 0.1, %v694_v45  ;;  %2482 = vmatpush1.bf16.msra.mxu1 %v3987_v41  ;;  %v750_v53 = vmul.f32 0.1, %v737_v35  ;;  %v4026_v39 = vld [vmem:[#allocation4 + $0x540] ss:$16 sps:$4 sm:$0xff]   ;;  %v692_v41 = vadd.f32 %v4555_v13, %v177_v33 }
 0x149   :  { %2440 = vmatprep.subr.bf16.mxu0 %v3992_v42  ;;  %v697_v54 = vpop.f32.mrf.mxu0  ;;  %2483 = vmatprep.subr.bf16.mxu1 %v3995_v44  ;;  %v740_v57 = vpop.f32.mrf.mxu1  ;;  %v696_v42 = vadd.f32 %v4560_v47, %v177_v33  ;;  %v4034_v44 = vld [vmem:[#allocation4 + $0x524] ss:$16 sps:$4 sm:$0xff]   ;;  %v4080_v33 = vld [vmem:[#allocation4 + $0x28] ss:$16 sps:$4 sm:$0xff]  }
 0x14a   :  { %v698_v56 = vadd.f32 %v697_v54, %v181_v37  ;;  %v741_v58 = vadd.f32 %v740_v57, %v189_v38  ;;  %v764_v60 = vmax.f32 %v694_v45, %v748_v49  ;;  %v766_v3 = vmax.f32 %v737_v35, %v750_v53  ;;  %v4031_v38 = vld [vmem:[#allocation4 + $0x744] ss:$16 sps:$4 sm:$0xff]   ;;  %v4038_v54 = vld [vmem:[#allocation4 + $0x500] ss:$16 sps:$4 sm:$0xff]  }
 0x14b   :  { %v185_v37 = vrot.slane %v4527_v26, %v184_v30  ;;  %v4037_v35 = vld [vmem:[#allocation4 + $0x724] ss:$16 sps:$4 sm:$0xff]   ;;  %v4032_v26 = vld [vmem:[#allocation4 + $0x520] ss:$16 sps:$4 sm:$0xff]   ;;  %v747_v49 = vmul.f32 0.1, %v692_v41 }
 0x14c   :  { %2441 = vmatpush1.bf16.msra.mxu0 %v3990_v48  ;;  %v756_v61 = vmul.f32 0.1, %v698_v56  ;;  %2484 = vmatpush1.bf16.msra.mxu1 %v3993_v51  ;;  %v758_v4 = vmul.f32 0.1, %v741_v58  ;;  %v4035_v48 = vld [vmem:[#allocation4 + $0x720] ss:$16 sps:$4 sm:$0xff]  }
 0x14d   :  { %2442 = vmatprep.subr.bf16.mxu0 %v3998_v52  ;;  %2485 = vmatprep.subr.bf16.mxu1 %v4001_v55  ;;  %v735_v45 = vadd.f32 %v4558_v40, %v185_v37  ;;  %v739_v46 = vadd.f32 %v4562_v50, %v185_v37  ;;  %v755_v51 = vmul.f32 0.1, %v696_v42  ;;  %v4040_v13 = vld [vmem:[#allocation4 + $0x504] ss:$16 sps:$4 sm:$0xff]   ;;  %v763_v55 = vmax.f32 %v692_v41, %v747_v49  ;;  %v4041_v50 = vld [vmem:[#allocation4 + $0x700] ss:$16 sps:$4 sm:$0xff]  }
 0x14e   :  { %v772_v7 = vmax.f32 %v698_v56, %v756_v61  ;;  %v774_v8 = vmax.f32 %v741_v58, %v758_v4  ;;  %v4043_v53 = vld [vmem:[#allocation4 + $0x704] ss:$16 sps:$4 sm:$0xff]   ;;  %v4046_v56 = vld [vmem:[#allocation4 + $0xec] ss:$16 sps:$4 sm:$0xff]   ;;  %v4077_v30 = vld [vmem:[#allocation4 + $0x248] ss:$16 sps:$4 sm:$0xff]  }
 0x14f   :  { %v749_v52 = vmul.f32 0.1, %v735_v45  ;;  %v757_v47 = vmul.f32 0.1, %v739_v46  ;;  %v771_v40 = vmax.f32 %v696_v42, %v755_v51  ;;  %v4055_v4 = vld [vmem:[#allocation4 + $0x2cc] ss:$16 sps:$4 sm:$0xff]  }
 0x150   :  { %2443 = vmatpush2.bf16.msra.mxu0 %v3996_v59  ;;  %v4564_v10 = vpack.c.bf16 %v772_v7, %v764_v60  ;;  %2486 = vmatpush2.bf16.msra.mxu1 %v3999_v62  ;;  %v4566_v14 = vpack.c.bf16 %v774_v8, %v766_v3  ;;  %v4049_v59 = vld [vmem:[#allocation4 + $0x2ec] ss:$16 sps:$4 sm:$0xff]   ;;  %v4044_v60 = vld [vmem:[#allocation4 + $0xe8] ss:$16 sps:$4 sm:$0xff]  }
 0x151   :  { %2444 = vmatprep.subr.bf16.mxu0 %v4004_v0  ;;  %2487 = vmatprep.subr.bf16.mxu1 %v4007_v6  ;;  %v765_v57 = vmax.f32 %v735_v45, %v749_v52  ;;  %v773_v58 = vmax.f32 %v739_v46, %v757_v47  ;;  %v4578_v61 = vpack.c.bf16 %v771_v40, %v763_v55  ;;  %v4047_v62 = vld [vmem:[#allocation4 + $0x2e8] ss:$16 sps:$4 sm:$0xff]   ;;  %v4052_v3 = vld [vmem:[#allocation4 + $0xcc] ss:$16 sps:$4 sm:$0xff]  }
 0x152   :  { %2458 = vmatprep.mubr.bf16.mxu0 %v4564_v10  ;;  %2501 = vmatprep.mubr.bf16.mxu1 %v4566_v14  ;;  %v4050_v6 = vld [vmem:[#allocation4 + $0xc8] ss:$16 sps:$4 sm:$0xff]   ;;  %v4058_v8 = vld [vmem:[#allocation4 + $0xac] ss:$16 sps:$4 sm:$0xff]  }
 0x153   :  { %v4580_v0 = vpack.c.bf16 %v773_v58, %v765_v57  ;;  %v4053_v7 = vld [vmem:[#allocation4 + $0x2c8] ss:$16 sps:$4 sm:$0xff]   ;;  %v4091_v37 = vld [vmem:[#allocation4 + $0x20c] ss:$16 sps:$4 sm:$0xff]  }
 0x154   :  { %2445 = vmatpush2.bf16.msra.mxu0 %v4002_v9  ;;  %2488 = vmatpush2.bf16.msra.mxu1 %v4005_v11  ;;  %v4061_v9 = vld [vmem:[#allocation4 + $0x2ac] ss:$16 sps:$4 sm:$0xff]   ;;  %v4056_v11 = vld [vmem:[#allocation4 + $0xa8] ss:$16 sps:$4 sm:$0xff]  }
 0x155   :  { %2446 = vmatprep.subr.bf16.mxu0 %v4010_v12  ;;  %2489 = vmatprep.subr.bf16.mxu1 %v4013_v15  ;;  %v4059_v12 = vld [vmem:[#allocation4 + $0x2a8] ss:$16 sps:$4 sm:$0xff]   ;;  %v4064_v15 = vld [vmem:[#allocation4 + $0x8c] ss:$16 sps:$4 sm:$0xff]  }
 0x156   :  { %v4094_v41 = vld [vmem:[#allocation4 + $0x1ec] ss:$16 sps:$4 sm:$0xff]   ;;  %v4104_v51 = vld [vmem:[#allocation4 + $0x1a8] ss:$16 sps:$4 sm:$0xff]  }
 0x157   :  { %v4097_v42 = vld [vmem:[#allocation4 + $0x3ec] ss:$16 sps:$4 sm:$0xff]  }
 0x158   :  { %2447 = vmatpush2.bf16.msra.mxu0 %v4008_v16  ;;  %2490 = vmatpush2.bf16.msra.mxu1 %v4011_v17  ;;  %v4067_v16 = vld [vmem:[#allocation4 + $0x28c] ss:$16 sps:$4 sm:$0xff]   ;;  %v4062_v17 = vld [vmem:[#allocation4 + $0x88] ss:$16 sps:$4 sm:$0xff]  }
 0x159   :  { %2448 = vmatprep.subr.bf16.mxu0 %v4016_v18  ;;  %2491 = vmatprep.subr.bf16.mxu1 %v4019_v19  ;;  %v4070_v18 = vld [vmem:[#allocation4 + $0x6c] ss:$16 sps:$4 sm:$0xff]  }
 0x15a   :  { %v4073_v19 = vld [vmem:[#allocation4 + $0x26c] ss:$16 sps:$4 sm:$0xff]  }
 0x15b   :  { %v4100_v45 = vld [vmem:[#allocation4 + $0x1cc] ss:$16 sps:$4 sm:$0xff]  }
 0x15c   :  { %2449 = vmatpush2.bf16.msra.mxu0 %v4014_v20  ;;  %2492 = vmatpush2.bf16.msra.mxu1 %v4017_v28  ;;  %v4071_v20 = vld [vmem:[#allocation4 + $0x268] ss:$16 sps:$4 sm:$0xff]   ;;  %v4079_v28 = vld [vmem:[#allocation4 + $0x24c] ss:$16 sps:$4 sm:$0xff]  }
 0x15d   :  { %2450 = vmatprep.subr.bf16.mxu0 %v4022_v29  ;;  %2493 = vmatprep.subr.bf16.mxu1 %v4025_v31  ;;  %v4074_v29 = vld [vmem:[#allocation4 + $0x48] ss:$16 sps:$4 sm:$0xff]   ;;  %v4082_v31 = vld [vmem:[#allocation4 + $0x2c] ss:$16 sps:$4 sm:$0xff]  }
 0x15e   :  { %v4103_v46 = vld [vmem:[#allocation4 + $0x3cc] ss:$16 sps:$4 sm:$0xff]  }
 0x15f   :  { %v4109_v49 = vld [vmem:[#allocation4 + $0x3ac] ss:$16 sps:$4 sm:$0xff]  }
 0x160   :  { %2451 = vmatpush2.bf16.msra.mxu0 %v4020_v32  ;;  %2494 = vmatpush2.bf16.msra.mxu1 %v4023_v34  ;;  %v4085_v32 = vld [vmem:[#allocation4 + $0x22c] ss:$16 sps:$4 sm:$0xff]   ;;  %v4083_v34 = vld [vmem:[#allocation4 + $0x228] ss:$16 sps:$4 sm:$0xff]  }
 0x161   :  { %2452 = vmatprep.subr.bf16.mxu0 %v4028_v36  ;;  %2495 = vmatprep.subr.bf16.mxu1 %v4031_v38  ;;  %v4088_v36 = vld [vmem:[#allocation4 + $0xc] ss:$16 sps:$4 sm:$0xff]   ;;  %v4086_v38 = vld [vmem:[#allocation4 + $0x8] ss:$16 sps:$4 sm:$0xff]  }
 0x162   :  { %v4112_v52 = vld [vmem:[#allocation4 + $0x18c] ss:$16 sps:$4 sm:$0xff]  }
 0x163   :  { %v4115_v47 = vld [vmem:[#allocation4 + $0x38c] ss:$16 sps:$4 sm:$0xff]  }
 0x164   :  { %2453 = vmatpush2.bf16.msra.mxu0 %v4026_v39  ;;  %2496 = vmatpush2.bf16.msra.mxu1 %v4029_v43  ;;  %v4089_v39 = vld [vmem:[#allocation4 + $0x208] ss:$16 sps:$4 sm:$0xff]   ;;  %v4118_v55 = vld [vmem:[#allocation4 + $0x16c] ss:$16 sps:$4 sm:$0xff]  }
 0x165   :  { %2454 = vmatprep.subr.bf16.mxu0 %v4034_v44  ;;  %2497 = vmatprep.subr.bf16.mxu1 %v4037_v35  ;;  %v4092_v43 = vld [vmem:[#allocation4 + $0x1e8] ss:$16 sps:$4 sm:$0xff]   ;;  %v4121_v40 = vld [vmem:[#allocation4 + $0x36c] ss:$16 sps:$4 sm:$0xff]  }
 0x166   :  { %v4095_v44 = vld [vmem:[#allocation4 + $0x3e8] ss:$16 sps:$4 sm:$0xff]   ;;  %v4124_v57 = vld [vmem:[#allocation4 + $0x14c] ss:$16 sps:$4 sm:$0xff]  }
 0x167   :  { %v4098_v35 = vld [vmem:[#allocation4 + $0x1c8] ss:$16 sps:$4 sm:$0xff]   ;;  %v4127_v58 = vld [vmem:[#allocation4 + $0x34c] ss:$16 sps:$4 sm:$0xff]  }
 0x168   :  { %2455 = vmatpush2.bf16.msra.mxu0 %v4032_v26  ;;  %2498 = vmatpush2.bf16.msra.mxu1 %v4035_v48  ;;  %v4101_v26 = vld [vmem:[#allocation4 + $0x3c8] ss:$16 sps:$4 sm:$0xff]   ;;  %v4106_v48 = vld [vmem:[#allocation4 + $0x1ac] ss:$16 sps:$4 sm:$0xff]  }
 0x169   :  { %2456 = vmatprep.subr.bf16.mxu0 %v4040_v13  ;;  %2499 = vmatprep.subr.bf16.mxu1 %v4043_v53  ;;  %v4107_v13 = vld [vmem:[#allocation4 + $0x3a8] ss:$16 sps:$4 sm:$0xff]  }
 0x16a   :  { %v4110_v53 = vld [vmem:[#allocation4 + $0x188] ss:$16 sps:$4 sm:$0xff]  }
 0x16c   :  { %2457 = vmatpush2.bf16.msra.mxu0 %v4038_v54  ;;  %2500 = vmatpush2.bf16.msra.mxu1 %v4041_v50  ;;  %v4113_v54 = vld [vmem:[#allocation4 + $0x388] ss:$16 sps:$4 sm:$0xff]  }
 0x16d   :  { %2512 = vmatprep.subr.bf16.mxu0 %v4046_v56  ;;  %2555 = vmatprep.subr.bf16.mxu1 %v4049_v59  ;;  %v4116_v50 = vld [vmem:[#allocation4 + $0x168] ss:$16 sps:$4 sm:$0xff]  }
 0x16e   :  { %v4119_v56 = vld [vmem:[#allocation4 + $0x368] ss:$16 sps:$4 sm:$0xff]  }
 0x16f   :  { %2459 = vmatmul.mubr.bf16.vlgmr.msra.gmra.mxu0 %v4578_v61  ;;  %2502 = vmatmul.mubr.bf16.vlgmr.msra.gmra.mxu1 %v4580_v0  ;;  %v4122_v59 = vld [vmem:[#allocation4 + $0x148] ss:$16 sps:$4 sm:$0xff]  }
 0x170   :  { %2513 = vmatpush1.bf16.msra.mxu0 %v4044_v60  ;;  %2544 = vmatprep.mubr.bf16.mxu0 %v4540_v63  ;;  %v4065_v63 = vld [vmem:[#allocation4 + $0x288] ss:$16 sps:$4 sm:$0xff]  }
 0x171   :  { %2556 = vmatpush1.bf16.msra.mxu1 %v4047_v62  ;;  %2587 = vmatprep.mubr.bf16.mxu1 %v4544_v2  ;;  %v4068_v2 = vld [vmem:[#allocation4 + $0x68] ss:$16 sps:$4 sm:$0xff]   ;;  %v4130_v62 = vld [vmem:[#allocation4 + $0x12c] ss:$16 sps:$4 sm:$0xff]  }
 0x172   :  { %2514 = vmatprep.subr.bf16.mxu0 %v4052_v3  ;;  %2557 = vmatprep.subr.bf16.mxu1 %v4055_v4  ;;  %v4125_v60 = vld [vmem:[#allocation4 + $0x348] ss:$16 sps:$4 sm:$0xff]   ;;  %v4133_v3 = vld [vmem:[#allocation4 + $0x32c] ss:$16 sps:$4 sm:$0xff]  }
 0x173   :  { %v4128_v4 = vld [vmem:[#allocation4 + $0x128] ss:$16 sps:$4 sm:$0xff]  }
 0x174   :  { %2515 = vmatpush1.bf16.msra.mxu0 %v4050_v6  ;;  %v4131_v6 = vld [vmem:[#allocation4 + $0x328] ss:$16 sps:$4 sm:$0xff]  }
 0x175   :  { %2558 = vmatpush1.bf16.msra.mxu1 %v4053_v7  ;;  %2516 = vmatprep.subr.bf16.mxu0 %v4058_v8  ;;  %v4136_v7 = vld [vmem:[#allocation4 + $0x10c] ss:$16 sps:$4 sm:$0xff]  }
 0x176   :  { %2559 = vmatprep.subr.bf16.mxu1 %v4061_v9  ;;  %v4139_v8 = vld [vmem:[#allocation4 + $0x30c] ss:$16 sps:$4 sm:$0xff]   ;;  %v4134_v9 = vld [vmem:[#allocation4 + $0x108] ss:$16 sps:$4 sm:$0xff]  }
 0x178   :  { %2517 = vmatpush1.bf16.msra.mxu0 %v4056_v11  ;;  %v4137_v11 = vld [vmem:[#allocation4 + $0x308] ss:$16 sps:$4 sm:$0xff]  }
 0x179   :  { %2560 = vmatpush1.bf16.msra.mxu1 %v4059_v12  ;;  %2518 = vmatprep.subr.bf16.mxu0 %v4064_v15  ;;  %v4142_v12 = vld [vmem:[#allocation4 + $0x4ec] ss:$16 sps:$4 sm:$0xff]  }
 0x17a   :  { %2561 = vmatprep.subr.bf16.mxu1 %v4067_v16  ;;  %v4145_v15 = vld [vmem:[#allocation4 + $0x6ec] ss:$16 sps:$4 sm:$0xff]   ;;  %v4140_v16 = vld [vmem:[#allocation4 + $0x4e8] ss:$16 sps:$4 sm:$0xff]  }
 0x17c   :  { %2519 = vmatpush1.bf16.msra.mxu0 %v4062_v17  ;;  %v4143_v17 = vld [vmem:[#allocation4 + $0x6e8] ss:$16 sps:$4 sm:$0xff]  }
 0x17d   :  { %2562 = vmatpush1.bf16.msra.mxu1 %v4065_v63  ;;  %2520 = vmatprep.subr.bf16.mxu0 %v4070_v18  ;;  %v4148_v63 = vld [vmem:[#allocation4 + $0x4cc] ss:$16 sps:$4 sm:$0xff]  }
 0x17e   :  { %2563 = vmatprep.subr.bf16.mxu1 %v4073_v19  ;;  %v4151_v18 = vld [vmem:[#allocation4 + $0x6cc] ss:$16 sps:$4 sm:$0xff]   ;;  %v4146_v19 = vld [vmem:[#allocation4 + $0x4c8] ss:$16 sps:$4 sm:$0xff]  }
 0x180   :  { %2521 = vmatpush1.bf16.msra.mxu0 %v4068_v2  ;;  %v4149_v2 = vld [vmem:[#allocation4 + $0x6c8] ss:$16 sps:$4 sm:$0xff]  }
 0x181   :  { %2564 = vmatpush1.bf16.msra.mxu1 %v4071_v20  ;;  %2522 = vmatprep.subr.bf16.mxu0 %v4076_v21  ;;  %v4154_v20 = vld [vmem:[#allocation4 + $0x4ac] ss:$16 sps:$4 sm:$0xff]  }
 0x182   :  { %2565 = vmatprep.subr.bf16.mxu1 %v4079_v28  ;;  %v4157_v21 = vld [vmem:[#allocation4 + $0x6ac] ss:$16 sps:$4 sm:$0xff]   ;;  %v4152_v28 = vld [vmem:[#allocation4 + $0x4a8] ss:$16 sps:$4 sm:$0xff]  }
 0x184   :  { %2523 = vmatpush1.bf16.msra.mxu0 %v4074_v29  ;;  %v4160_v29 = vld [vmem:[#allocation4 + $0x48c] ss:$16 sps:$4 sm:$0xff]  }
 0x185   :  { %2566 = vmatpush1.bf16.msra.mxu1 %v4077_v30  ;;  %2524 = vmatprep.subr.bf16.mxu0 %v4082_v31  ;;  %v4158_v30 = vld [vmem:[#allocation4 + $0x488] ss:$16 sps:$4 sm:$0xff]   ;;  %v4166_v31 = vld [vmem:[#allocation4 + $0x46c] ss:$16 sps:$4 sm:$0xff]  }
 0x186   :  { %2567 = vmatprep.subr.bf16.mxu1 %v4085_v32  ;;  %v4169_v32 = vld [vmem:[#allocation4 + $0x66c] ss:$16 sps:$4 sm:$0xff]  }
 0x188   :  { %2525 = vmatpush1.bf16.msra.mxu0 %v4080_v33  ;;  %v4167_v33 = vld [vmem:[#allocation4 + $0x668] ss:$16 sps:$4 sm:$0xff]  }
 0x189   :  { %2568 = vmatpush1.bf16.msra.mxu1 %v4083_v34  ;;  %2526 = vmatprep.subr.bf16.mxu0 %v4088_v36  ;;  %v4172_v34 = vld [vmem:[#allocation4 + $0x44c] ss:$16 sps:$4 sm:$0xff]  }
 0x18a   :  { %2569 = vmatprep.subr.bf16.mxu1 %v4091_v37  ;;  %v4175_v36 = vld [vmem:[#allocation4 + $0x64c] ss:$16 sps:$4 sm:$0xff]   ;;  %v4170_v37 = vld [vmem:[#allocation4 + $0x448] ss:$16 sps:$4 sm:$0xff]  }
 0x18c   :  { %2527 = vmatpush1.bf16.msra.mxu0 %v4086_v38  ;;  %v4173_v38 = vld [vmem:[#allocation4 + $0x648] ss:$16 sps:$4 sm:$0xff]  }
 0x18d   :  { %2570 = vmatpush1.bf16.msra.mxu1 %v4089_v39  ;;  %2528 = vmatprep.subr.bf16.mxu0 %v4094_v41  ;;  %v4178_v39 = vld [vmem:[#allocation4 + $0x42c] ss:$16 sps:$4 sm:$0xff]  }
 0x18e   :  { %2571 = vmatprep.subr.bf16.mxu1 %v4097_v42  ;;  %v4181_v41 = vld [vmem:[#allocation4 + $0x62c] ss:$16 sps:$4 sm:$0xff]   ;;  %v4176_v42 = vld [vmem:[#allocation4 + $0x428] ss:$16 sps:$4 sm:$0xff]  }
 0x190   :  { %2529 = vmatpush2.bf16.msra.mxu0 %v4092_v43  ;;  %v4179_v43 = vld [vmem:[#allocation4 + $0x628] ss:$16 sps:$4 sm:$0xff]  }
 0x191   :  { %2572 = vmatpush2.bf16.msra.mxu1 %v4095_v44  ;;  %2530 = vmatprep.subr.bf16.mxu0 %v4100_v45  ;;  %v4184_v44 = vld [vmem:[#allocation4 + $0x40c] ss:$16 sps:$4 sm:$0xff]  }
 0x192   :  { %2573 = vmatprep.subr.bf16.mxu1 %v4103_v46  ;;  %v4187_v45 = vld [vmem:[#allocation4 + $0x60c] ss:$16 sps:$4 sm:$0xff]   ;;  %v4182_v46 = vld [vmem:[#allocation4 + $0x408] ss:$16 sps:$4 sm:$0xff]  }
 0x194   :  { %2531 = vmatpush2.bf16.msra.mxu0 %v4098_v35  ;;  %v4185_v35 = vld [vmem:[#allocation4 + $0x608] ss:$16 sps:$4 sm:$0xff]  }
 0x195   :  { %2574 = vmatpush2.bf16.msra.mxu1 %v4101_v26  ;;  %2532 = vmatprep.subr.bf16.mxu0 %v4106_v48  ;;  %v4190_v26 = vld [vmem:[#allocation4 + $0x5ec] ss:$16 sps:$4 sm:$0xff]  }
 0x196   :  { %2575 = vmatprep.subr.bf16.mxu1 %v4109_v49  ;;  %v4193_v48 = vld [vmem:[#allocation4 + $0x7ec] ss:$16 sps:$4 sm:$0xff]   ;;  %v4188_v49 = vld [vmem:[#allocation4 + $0x5e8] ss:$16 sps:$4 sm:$0xff]  }
 0x198   :  { %2533 = vmatpush2.bf16.msra.mxu0 %v4104_v51  ;;  %v4191_v51 = vld [vmem:[#allocation4 + $0x7e8] ss:$16 sps:$4 sm:$0xff]  }
 0x199   :  { %2576 = vmatpush2.bf16.msra.mxu1 %v4107_v13  ;;  %2534 = vmatprep.subr.bf16.mxu0 %v4112_v52  ;;  %v4196_v13 = vld [vmem:[#allocation4 + $0x5cc] ss:$16 sps:$4 sm:$0xff]  }
 0x19a   :  { %2577 = vmatprep.subr.bf16.mxu1 %v4115_v47  ;;  %v4199_v52 = vld [vmem:[#allocation4 + $0x7cc] ss:$16 sps:$4 sm:$0xff]   ;;  %v4194_v47 = vld [vmem:[#allocation4 + $0x5c8] ss:$16 sps:$4 sm:$0xff]  }
 0x19c   :  { %2535 = vmatpush2.bf16.msra.mxu0 %v4110_v53  ;;  %v4197_v53 = vld [vmem:[#allocation4 + $0x7c8] ss:$16 sps:$4 sm:$0xff]  }
 0x19d   :  { %2578 = vmatpush2.bf16.msra.mxu1 %v4113_v54  ;;  %2536 = vmatprep.subr.bf16.mxu0 %v4118_v55  ;;  %v4202_v54 = vld [vmem:[#allocation4 + $0x5ac] ss:$16 sps:$4 sm:$0xff]  }
 0x19e   :  { %2579 = vmatprep.subr.bf16.mxu1 %v4121_v40  ;;  %v4205_v55 = vld [vmem:[#allocation4 + $0x7ac] ss:$16 sps:$4 sm:$0xff]   ;;  %v4200_v40 = vld [vmem:[#allocation4 + $0x5a8] ss:$16 sps:$4 sm:$0xff]  }
 0x1a0   :  { %2537 = vmatpush2.bf16.msra.mxu0 %v4116_v50  ;;  %v4203_v50 = vld [vmem:[#allocation4 + $0x7a8] ss:$16 sps:$4 sm:$0xff]  }
 0x1a1   :  { %2580 = vmatpush2.bf16.msra.mxu1 %v4119_v56  ;;  %2538 = vmatprep.subr.bf16.mxu0 %v4124_v57  ;;  %v4208_v56 = vld [vmem:[#allocation4 + $0x58c] ss:$16 sps:$4 sm:$0xff]  }
 0x1a2   :  { %2581 = vmatprep.subr.bf16.mxu1 %v4127_v58  ;;  %v4211_v57 = vld [vmem:[#allocation4 + $0x78c] ss:$16 sps:$4 sm:$0xff]   ;;  %v4206_v58 = vld [vmem:[#allocation4 + $0x588] ss:$16 sps:$4 sm:$0xff]  }
 0x1a4   :  { %2539 = vmatpush2.bf16.msra.mxu0 %v4122_v59  ;;  %v4209_v59 = vld [vmem:[#allocation4 + $0x788] ss:$16 sps:$4 sm:$0xff]  }
 0x1a5   :  { %2582 = vmatpush2.bf16.msra.mxu1 %v4125_v60  ;;  %2540 = vmatprep.subr.bf16.mxu0 %v4130_v62  ;;  %v4214_v60 = vld [vmem:[#allocation4 + $0x56c] ss:$16 sps:$4 sm:$0xff]  }
 0x1a6   :  { %2583 = vmatprep.subr.bf16.mxu1 %v4133_v3  ;;  %v4217_v62 = vld [vmem:[#allocation4 + $0x76c] ss:$16 sps:$4 sm:$0xff]   ;;  %v4212_v3 = vld [vmem:[#allocation4 + $0x568] ss:$16 sps:$4 sm:$0xff]  }
 0x1a8   :  { %2541 = vmatpush2.bf16.msra.mxu0 %v4128_v4  ;;  %v4215_v4 = vld [vmem:[#allocation4 + $0x768] ss:$16 sps:$4 sm:$0xff]  }
 0x1a9   :  { %2584 = vmatpush2.bf16.msra.mxu1 %v4131_v6  ;;  %2542 = vmatprep.subr.bf16.mxu0 %v4136_v7  ;;  %v4220_v6 = vld [vmem:[#allocation4 + $0x54c] ss:$16 sps:$4 sm:$0xff]  }
 0x1aa   :  { %2585 = vmatprep.subr.bf16.mxu1 %v4139_v8  ;;  %v4223_v7 = vld [vmem:[#allocation4 + $0x74c] ss:$16 sps:$4 sm:$0xff]   ;;  %v4218_v8 = vld [vmem:[#allocation4 + $0x548] ss:$16 sps:$4 sm:$0xff]  }
 0x1ac   :  { %2543 = vmatpush2.bf16.msra.mxu0 %v4134_v9  ;;  %v4221_v9 = vld [vmem:[#allocation4 + $0x748] ss:$16 sps:$4 sm:$0xff]  }
 0x1ad   :  { %2586 = vmatpush2.bf16.msra.mxu1 %v4137_v11  ;;  %2598 = vmatprep.subr.bf16.mxu0 %v4142_v12  ;;  %v4226_v11 = vld [vmem:[#allocation4 + $0x52c] ss:$16 sps:$4 sm:$0xff]  }
 0x1ae   :  { %2641 = vmatprep.subr.bf16.mxu1 %v4145_v15  ;;  %v4229_v12 = vld [vmem:[#allocation4 + $0x72c] ss:$16 sps:$4 sm:$0xff]   ;;  %v4224_v15 = vld [vmem:[#allocation4 + $0x528] ss:$16 sps:$4 sm:$0xff]  }
 0x1af   :  { %2545 = vmatmul.mubr.bf16.vlgmr.msra.gmra.mxu0 %v4542_v1  ;;  %v4155_v1 = vld [vmem:[#allocation4 + $0x6a8] ss:$16 sps:$4 sm:$0xff]  }
 0x1b0   :  { %2588 = vmatmul.mubr.bf16.vlgmr.msra.gmra.mxu1 %v4546_v5  ;;  %2599 = vmatpush1.bf16.msra.mxu0 %v4140_v16  ;;  %v4163_v5 = vld [vmem:[#allocation4 + $0x68c] ss:$16 sps:$4 sm:$0xff]   ;;  %v4227_v16 = vld [vmem:[#allocation4 + $0x728] ss:$16 sps:$4 sm:$0xff]  }
 0x1b1   :  { %2630 = vmatprep.mubr.bf16.mxu0 %v4564_v10  ;;  %2642 = vmatpush1.bf16.msra.mxu1 %v4143_v17  ;;  %v4161_v10 = vld [vmem:[#allocation4 + $0x688] ss:$16 sps:$4 sm:$0xff]   ;;  %v4232_v17 = vld [vmem:[#allocation4 + $0x50c] ss:$16 sps:$4 sm:$0xff]  }
 0x1b2   :  { %2673 = vmatprep.mubr.bf16.mxu1 %v4566_v14  ;;  %2600 = vmatprep.subr.bf16.mxu0 %v4148_v63  ;;  %v4164_v14 = vld [vmem:[#allocation4 + $0x468] ss:$16 sps:$4 sm:$0xff]   ;;  %v4235_v63 = vld [vmem:[#allocation4 + $0x70c] ss:$16 sps:$4 sm:$0xff]  }
 0x1b3   :  { %2643 = vmatprep.subr.bf16.mxu1 %v4151_v18  ;;  %v4230_v18 = vld [vmem:[#allocation4 + $0x508] ss:$16 sps:$4 sm:$0xff]  }
 0x1b4   :  { %2601 = vmatpush1.bf16.msra.mxu0 %v4146_v19  ;;  %v4233_v19 = vld [vmem:[#allocation4 + $0x708] ss:$16 sps:$4 sm:$0xff]  }
 0x1b5   :  { %2644 = vmatpush1.bf16.msra.mxu1 %v4149_v2  ;;  %2602 = vmatprep.subr.bf16.mxu0 %v4154_v20  ;;  %v4238_v2 = vld [vmem:[#allocation6 + $0x74] ss:$8 sps:$4 sm:$0xff]   ;;  %v4236_v20 = vld [vmem:[#allocation6 + $0x70] ss:$8 sps:$4 sm:$0xff]  }
 0x1b6   :  { %2645 = vmatprep.subr.bf16.mxu1 %v4157_v21  ;;  %v4241_v21 = vld [vmem:[#allocation6 + $0x64] ss:$8 sps:$4 sm:$0xff]  }
 0x1b8   :  { %2603 = vmatpush1.bf16.msra.mxu0 %v4152_v28  ;;  %v4239_v28 = vld [vmem:[#allocation6 + $0x60] ss:$8 sps:$4 sm:$0xff]  }
 0x1b9   :  { %2646 = vmatpush1.bf16.msra.mxu1 %v4155_v1  ;;  %2604 = vmatprep.subr.bf16.mxu0 %v4160_v29  ;;  %v4244_v1 = vld [vmem:[#allocation6 + $0x54] ss:$8 sps:$4 sm:$0xff]   ;;  %v4242_v29 = vld [vmem:[#allocation6 + $0x50] ss:$8 sps:$4 sm:$0xff]  }
 0x1ba   :  { %2647 = vmatprep.subr.bf16.mxu1 %v4163_v5  ;;  %v4247_v5 = vld [vmem:[#allocation6 + $0x44] ss:$8 sps:$4 sm:$0xff]  }
 0x1bc   :  { %2605 = vmatpush1.bf16.msra.mxu0 %v4158_v30  ;;  %v4245_v30 = vld [vmem:[#allocation6 + $0x40] ss:$8 sps:$4 sm:$0xff]  }
 0x1bd   :  { %2648 = vmatpush1.bf16.msra.mxu1 %v4161_v10  ;;  %2606 = vmatprep.subr.bf16.mxu0 %v4166_v31  ;;  %v4284_v10 = vld [vmem:[#allocation6 + $0x170] ss:$8 sps:$4 sm:$0xff]   ;;  %v4286_v31 = vld [vmem:[#allocation6 + $0x174] ss:$8 sps:$4 sm:$0xff]  }
 0x1be   :  { %2649 = vmatprep.subr.bf16.mxu1 %v4169_v32  ;;  %v4250_v32 = vld [vmem:[#allocation6 + $0x34] ss:$8 sps:$4 sm:$0xff]  }
 0x1c0   :  { %2607 = vmatpush1.bf16.msra.mxu0 %v4164_v14  ;;  %v4289_v14 = vld [vmem:[#allocation6 + $0x164] ss:$8 sps:$4 sm:$0xff]  }
 0x1c1   :  { %2650 = vmatpush1.bf16.msra.mxu1 %v4167_v33  ;;  %2608 = vmatprep.subr.bf16.mxu0 %v4172_v34  ;;  %v4292_v33 = vld [vmem:[#allocation6 + $0x154] ss:$8 sps:$4 sm:$0xff]   ;;  %v4253_v34 = vld [vmem:[#allocation6 + $0x24] ss:$8 sps:$4 sm:$0xff]  }
 0x1c2   :  { %2651 = vmatprep.subr.bf16.mxu1 %v4175_v36  ;;  %v4290_v36 = vld [vmem:[#allocation6 + $0x150] ss:$8 sps:$4 sm:$0xff]  }
 0x1c4   :  { %2609 = vmatpush1.bf16.msra.mxu0 %v4170_v37  ;;  %v4251_v37 = vld [vmem:[#allocation6 + $0x20] ss:$8 sps:$4 sm:$0xff]  }
 0x1c5   :  { %2652 = vmatpush1.bf16.msra.mxu1 %v4173_v38  ;;  %2610 = vmatprep.subr.bf16.mxu0 %v4178_v39  ;;  %v4295_v38 = vld [vmem:[#allocation6 + $0x144] ss:$8 sps:$4 sm:$0xff]   ;;  %v4256_v39 = vld [vmem:[#allocation6 + $0x14] ss:$8 sps:$4 sm:$0xff]  }
 0x1c6   :  { %2653 = vmatprep.subr.bf16.mxu1 %v4181_v41  ;;  %v4293_v41 = vld [vmem:[#allocation6 + $0x140] ss:$8 sps:$4 sm:$0xff]  }
 0x1c8   :  { %2611 = vmatpush1.bf16.msra.mxu0 %v4176_v42  ;;  %v4254_v42 = vld [vmem:[#allocation6 + $0x10] ss:$8 sps:$4 sm:$0xff]  }
 0x1c9   :  { %2654 = vmatpush1.bf16.msra.mxu1 %v4179_v43  ;;  %2612 = vmatprep.subr.bf16.mxu0 %v4184_v44  ;;  %v4298_v43 = vld [vmem:[#allocation6 + $0x134] ss:$8 sps:$4 sm:$0xff]   ;;  %v4259_v44 = vld [vmem:[#allocation6 + $0x4] ss:$8 sps:$4 sm:$0xff]  }
 0x1ca   :  { %2655 = vmatprep.subr.bf16.mxu1 %v4187_v45  ;;  %v4296_v45 = vld [vmem:[#allocation6 + $0x130] ss:$8 sps:$4 sm:$0xff]  }
 0x1cc   :  { %2613 = vmatpush1.bf16.msra.mxu0 %v4182_v46  ;;  %v4257_v46 = vld [vmem:[#allocation6] ss:$8 sps:$4 sm:$0xff]  }
 0x1cd   :  { %2656 = vmatpush1.bf16.msra.mxu1 %v4185_v35  ;;  %2614 = vmatprep.subr.bf16.mxu0 %v4190_v26  ;;  %v4301_v35 = vld [vmem:[#allocation6 + $0x124] ss:$8 sps:$4 sm:$0xff]   ;;  %v4262_v26 = vld [vmem:[#allocation6 + $0xf4] ss:$8 sps:$4 sm:$0xff]  }
 0x1ce   :  { %2657 = vmatprep.subr.bf16.mxu1 %v4193_v48  ;;  %v4299_v48 = vld [vmem:[#allocation6 + $0x120] ss:$8 sps:$4 sm:$0xff]  }
 0x1d0   :  { %2615 = vmatpush2.bf16.msra.mxu0 %v4188_v49  ;;  %v4260_v49 = vld [vmem:[#allocation6 + $0xf0] ss:$8 sps:$4 sm:$0xff]  }
 0x1d1   :  { %2658 = vmatpush2.bf16.msra.mxu1 %v4191_v51  ;;  %2616 = vmatprep.subr.bf16.mxu0 %v4196_v13  ;;  %v4304_v51 = vld [vmem:[#allocation6 + $0x114] ss:$8 sps:$4 sm:$0xff]   ;;  %v4265_v13 = vld [vmem:[#allocation6 + $0xe4] ss:$8 sps:$4 sm:$0xff]  }
 0x1d2   :  { %2659 = vmatprep.subr.bf16.mxu1 %v4199_v52  ;;  %v4302_v52 = vld [vmem:[#allocation6 + $0x110] ss:$8 sps:$4 sm:$0xff]  }
 0x1d4   :  { %2617 = vmatpush2.bf16.msra.mxu0 %v4194_v47  ;;  %v4263_v47 = vld [vmem:[#allocation6 + $0xe0] ss:$8 sps:$4 sm:$0xff]  }
 0x1d5   :  { %2660 = vmatpush2.bf16.msra.mxu1 %v4197_v53  ;;  %2618 = vmatprep.subr.bf16.mxu0 %v4202_v54  ;;  %v4307_v53 = vld [vmem:[#allocation6 + $0x104] ss:$8 sps:$4 sm:$0xff]   ;;  %v4268_v54 = vld [vmem:[#allocation6 + $0xd4] ss:$8 sps:$4 sm:$0xff]  }
 0x1d6   :  { %2661 = vmatprep.subr.bf16.mxu1 %v4205_v55  ;;  %v4305_v55 = vld [vmem:[#allocation6 + $0x100] ss:$8 sps:$4 sm:$0xff]  }
 0x1d8   :  { %2619 = vmatpush2.bf16.msra.mxu0 %v4200_v40  ;;  %v4266_v40 = vld [vmem:[#allocation6 + $0xd0] ss:$8 sps:$4 sm:$0xff]  }
 0x1d9   :  { %2662 = vmatpush2.bf16.msra.mxu1 %v4203_v50  ;;  %2620 = vmatprep.subr.bf16.mxu0 %v4208_v56  ;;  %v4310_v50 = vld [vmem:[#allocation6 + $0x1f4] ss:$8 sps:$4 sm:$0xff]   ;;  %v4271_v56 = vld [vmem:[#allocation6 + $0xc4] ss:$8 sps:$4 sm:$0xff]  }
 0x1da   :  { %2663 = vmatprep.subr.bf16.mxu1 %v4211_v57  ;;  %v4308_v57 = vld [vmem:[#allocation6 + $0x1f0] ss:$8 sps:$4 sm:$0xff]  }
 0x1dc   :  { %2621 = vmatpush2.bf16.msra.mxu0 %v4206_v58  ;;  %v4269_v58 = vld [vmem:[#allocation6 + $0xc0] ss:$8 sps:$4 sm:$0xff]  }
 0x1dd   :  { %2664 = vmatpush2.bf16.msra.mxu1 %v4209_v59  ;;  %2622 = vmatprep.subr.bf16.mxu0 %v4214_v60  ;;  %v4313_v59 = vld [vmem:[#allocation6 + $0x1e4] ss:$8 sps:$4 sm:$0xff]   ;;  %v4274_v60 = vld [vmem:[#allocation6 + $0xb4] ss:$8 sps:$4 sm:$0xff]  }
 0x1de   :  { %2665 = vmatprep.subr.bf16.mxu1 %v4217_v62  ;;  %v4311_v62 = vld [vmem:[#allocation6 + $0x1e0] ss:$8 sps:$4 sm:$0xff]  }
 0x1e0   :  { %2623 = vmatpush2.bf16.msra.mxu0 %v4212_v3  ;;  %v4272_v3 = vld [vmem:[#allocation6 + $0xb0] ss:$8 sps:$4 sm:$0xff]  }
 0x1e1   :  { %2666 = vmatpush2.bf16.msra.mxu1 %v4215_v4  ;;  %2624 = vmatprep.subr.bf16.mxu0 %v4220_v6  ;;  %v4316_v4 = vld [vmem:[#allocation6 + $0x1d4] ss:$8 sps:$4 sm:$0xff]   ;;  %v4277_v6 = vld [vmem:[#allocation6 + $0xa4] ss:$8 sps:$4 sm:$0xff]  }
 0x1e2   :  { %2667 = vmatprep.subr.bf16.mxu1 %v4223_v7  ;;  %v4314_v7 = vld [vmem:[#allocation6 + $0x1d0] ss:$8 sps:$4 sm:$0xff]  }
 0x1e4   :  { %2625 = vmatpush2.bf16.msra.mxu0 %v4218_v8  ;;  %v4275_v8 = vld [vmem:[#allocation6 + $0xa0] ss:$8 sps:$4 sm:$0xff]  }
 0x1e5   :  { %2668 = vmatpush2.bf16.msra.mxu1 %v4221_v9  ;;  %2626 = vmatprep.subr.bf16.mxu0 %v4226_v11  ;;  %v4319_v9 = vld [vmem:[#allocation6 + $0x1c4] ss:$8 sps:$4 sm:$0xff]  }
 0x1e6   :  { %2669 = vmatprep.subr.bf16.mxu1 %v4229_v12  ;;  %v4280_v12 = vld [vmem:[#allocation6 + $0x94] ss:$8 sps:$4 sm:$0xff]  }
 0x1e8   :  { %2627 = vmatpush2.bf16.msra.mxu0 %v4224_v15 }
 0x1e9   :  { %2670 = vmatpush2.bf16.msra.mxu1 %v4227_v16  ;;  %2628 = vmatprep.subr.bf16.mxu0 %v4232_v17  ;;  %v4317_v16 = vld [vmem:[#allocation6 + $0x1c0] ss:$8 sps:$4 sm:$0xff]  }
 0x1ea   :  { %2671 = vmatprep.subr.bf16.mxu1 %v4235_v63  ;;  %v4595_v17 = vld [vmem:[%s4623_s5 + $0x8] sm:$0xf]  ;;  %v4278_v63 = vld [vmem:[#allocation6 + $0x90] ss:$8 sps:$4 sm:$0xff]  }
 0x1ec   :  { %2629 = vmatpush2.bf16.msra.mxu0 %v4230_v18 }
 0x1ed   :  { %2672 = vmatpush2.bf16.msra.mxu1 %v4233_v19  ;;  %3099 = vmatprep.subr.bf16.mxu0 %v4238_v2  ;;  %v4283_v19 = vld [vmem:[#allocation6 + $0x84] ss:$8 sps:$4 sm:$0xff]  }
 0x1ee   :  { %3142 = vmatprep.subr.bf16.mxu1 %v4286_v31 }
 0x1ef   :  { %2631 = vmatmul.mubr.bf16.vlgmr.msra.gmra.mxu0 %v4578_v61  ;;  %v4287_v61 = vld [vmem:[#allocation6 + $0x160] ss:$8 sps:$4 sm:$0xff]   ;;  %v2374_v11 = vpop.f32.mrf.mxu0  ;;  %v2417_v15 = vpop.f32.mrf.mxu1 }
 0x1f0   :  { %2674 = vmatmul.mubr.bf16.vlgmr.msra.gmra.mxu1 %v4580_v0  ;;  %3100 = vmatpush1.bf16.msra.mxu0 %v4236_v20  ;;  %v4248_v0 = vld [vmem:[#allocation6 + $0x30] ss:$8 sps:$4 sm:$0xff]   ;;  %v1043_v20 = vrot.slane %v4595_v17, %v4521_v24 }
 0x1f1   :  { %3101 = vmatprep.subr.bf16.mxu0 %v4241_v21  ;;  %3143 = vmatpush1.bf16.msra.mxu1 %v4284_v10  ;;  %v2376_v18 = vpop.f32.mrf.mxu0  ;;  %v2419_v2 = vpop.f32.mrf.mxu1  ;;  %v1047_v21 = vrot.slane %v4595_v17, %v4518_v23 }
 0x1f2   :  { %3144 = vmatprep.subr.bf16.mxu1 %v4289_v14 }
 0x1f4   :  { %3102 = vmatpush1.bf16.msra.mxu0 %v4239_v28  ;;  %v4281_v28 = vld [vmem:[#allocation6 + $0x80] ss:$8 sps:$4 sm:$0xff]  }
 0x1f5   :  { %3103 = vmatprep.subr.bf16.mxu0 %v4244_v1  ;;  %3145 = vmatpush1.bf16.msra.mxu1 %v4287_v61  ;;  %v2378_v1 = vpop.f32.mrf.mxu0 }
 0x1f6   :  { %3146 = vmatprep.subr.bf16.mxu1 %v4292_v33  ;;  %v2379_v31 = vadd.f32 %v2378_v1, %v1043_v20  ;;  %v1051_v1 = vrot.slane %v4595_v17, %v168_v27 }
 0x1f7   :  { %v2380_v10 = vpop.f32.mrf.mxu0 }
 0x1f8   :  { %3104 = vmatpush1.bf16.msra.mxu0 %v4242_v29  ;;  %v2421_v29 = vpop.f32.mrf.mxu1  ;;  %v2381_v33 = vadd.f32 %v2380_v10, %v1047_v21 }
 0x1f9   :  { %3105 = vmatprep.subr.bf16.mxu0 %v4247_v5  ;;  %3147 = vmatpush1.bf16.msra.mxu1 %v4290_v36  ;;  %v2375_v5 = vadd.f32 %v2374_v11, %v1043_v20  ;;  %v4333_v11 = vld [vmem:[#allocation7 + $0x38] sm:$0xff]  }
 0x1fa   :  { %3148 = vmatprep.subr.bf16.mxu1 %v4295_v38  ;;  %v4322_v38 = vld [vmem:[#allocation6 + $0x1b4] ss:$8 sps:$4 sm:$0xff]  }
 0x1fb   :  { %v2418_v14 = vadd.f32 %v2417_v15, %v2375_v5  ;;  %v4335_v15 = vld [vmem:[#allocation7 + $0x30] sm:$0xff]  }
 0x1fc   :  { %3106 = vmatpush1.bf16.msra.mxu0 %v4245_v30  ;;  %v2377_v30 = vadd.f32 %v2376_v18, %v1047_v21  ;;  %v4338_v18 = vld [vmem:[#allocation7 + $0x60] sm:$0xff]  }
 0x1fd   :  { %3107 = vmatprep.subr.bf16.mxu0 %v4250_v32  ;;  %3149 = vmatpush1.bf16.msra.mxu1 %v4293_v41  ;;  %v2423_v32 = vpop.f32.mrf.mxu1 }
 0x1fe   :  { %3150 = vmatprep.subr.bf16.mxu1 %v4298_v43  ;;  %v4320_v43 = vld [vmem:[#allocation6 + $0x1b0] ss:$8 sps:$4 sm:$0xff]  }
 0x200   :  { %3108 = vmatpush1.bf16.msra.mxu0 %v4248_v0  ;;  %v2420_v0 = vadd.f32 %v2419_v2, %v2377_v30 }
 0x201   :  { %3109 = vmatprep.subr.bf16.mxu0 %v4253_v34  ;;  %3151 = vmatpush1.bf16.msra.mxu1 %v4296_v45  ;;  %v2424_v45 = vadd.f32 %v2423_v32, %v2381_v33 }
 0x202   :  { %3152 = vmatprep.subr.bf16.mxu1 %v4301_v35 }
 0x204   :  { %3110 = vmatpush1.bf16.msra.mxu0 %v4251_v37 }
 0x205   :  { %3111 = vmatprep.subr.bf16.mxu0 %v4256_v39  ;;  %3153 = vmatpush1.bf16.msra.mxu1 %v4299_v48  ;;  %v2422_v39 = vadd.f32 %v2421_v29, %v2379_v31  ;;  %v1055_v29 = vrot.slane %v4595_v17, %v172_v25 }
 0x206   :  { %3154 = vmatprep.subr.bf16.mxu1 %v4304_v51  ;;  %v4325_v51 = vld [vmem:[#allocation6 + $0x1a4] ss:$8 sps:$4 sm:$0xff]  }
 0x208   :  { %3112 = vmatpush1.bf16.msra.mxu0 %v4254_v42 }
 0x209   :  { %3113 = vmatprep.subr.bf16.mxu0 %v4259_v44  ;;  %3155 = vmatpush1.bf16.msra.mxu1 %v4302_v52 }
 0x20a   :  { %3156 = vmatprep.subr.bf16.mxu1 %v4307_v53 }
 0x20c   :  { %3114 = vmatpush1.bf16.msra.mxu0 %v4257_v46 }
 0x20d   :  { %3115 = vmatprep.subr.bf16.mxu0 %v4262_v26  ;;  %3157 = vmatpush1.bf16.msra.mxu1 %v4305_v55 }
 0x20e   :  { %3158 = vmatprep.subr.bf16.mxu1 %v4310_v50 }
 0x210   :  { %3116 = vmatpush2.bf16.msra.mxu0 %v4260_v49 }
 0x211   :  { %3117 = vmatprep.subr.bf16.mxu0 %v4265_v13  ;;  %3159 = vmatpush2.bf16.msra.mxu1 %v4308_v57 }
 0x212   :  { %3160 = vmatprep.subr.bf16.mxu1 %v4313_v59 }
 0x214   :  { %3118 = vmatpush2.bf16.msra.mxu0 %v4263_v47  ;;  %v4323_v47 = vld [vmem:[#allocation6 + $0x1a0] ss:$8 sps:$4 sm:$0xff]  }
 0x215   :  { %3119 = vmatprep.subr.bf16.mxu0 %v4268_v54  ;;  %3161 = vmatpush2.bf16.msra.mxu1 %v4311_v62 }
 0x216   :  { %3162 = vmatprep.subr.bf16.mxu1 %v4316_v4  ;;  %v4331_v4 = vld [vmem:[#allocation6 + $0x184] ss:$8 sps:$4 sm:$0xff]  }
 0x218   :  { %3120 = vmatpush2.bf16.msra.mxu0 %v4266_v40 }
 0x219   :  { %3121 = vmatprep.subr.bf16.mxu0 %v4271_v56  ;;  %3163 = vmatpush2.bf16.msra.mxu1 %v4314_v7  ;;  %v4328_v56 = vld [vmem:[#allocation6 + $0x194] ss:$8 sps:$4 sm:$0xff]  }
 0x21a   :  { %3164 = vmatprep.subr.bf16.mxu1 %v4319_v9  ;;  %v4332_v9 = vld [vmem:[#allocation7 + $0x78] sm:$0xff]  }
 0x21c   :  { %3122 = vmatpush2.bf16.msra.mxu0 %v4269_v58  ;;  %v4326_v58 = vld [vmem:[#allocation6 + $0x190] ss:$8 sps:$4 sm:$0xff]  }
 0x21d   :  { %3123 = vmatprep.subr.bf16.mxu0 %v4274_v60  ;;  %3165 = vmatpush2.bf16.msra.mxu1 %v4317_v16  ;;  %v4336_v16 = vld [vmem:[#allocation7 + $0x68] sm:$0xff]  }
 0x21e   :  { %3166 = vmatprep.subr.bf16.mxu1 %v4322_v38 }
 0x220   :  { %3124 = vmatpush2.bf16.msra.mxu0 %v4272_v3  ;;  %v4329_v3 = vld [vmem:[#allocation6 + $0x180] ss:$8 sps:$4 sm:$0xff]  }
 0x221   :  { %3125 = vmatprep.subr.bf16.mxu0 %v4277_v6  ;;  %3167 = vmatpush2.bf16.msra.mxu1 %v4320_v43 }
 0x222   :  { %3168 = vmatprep.subr.bf16.mxu1 %v4325_v51 }
 0x224   :  { %3126 = vmatpush2.bf16.msra.mxu0 %v4275_v8 }
 0x225   :  { %3127 = vmatprep.subr.bf16.mxu0 %v4280_v12  ;;  %3169 = vmatpush2.bf16.msra.mxu1 %v4323_v47  ;;  %v4334_v12 = vld [vmem:[#allocation7 + $0x70] sm:$0xff]  }
 0x226   :  { %3170 = vmatprep.subr.bf16.mxu1 %v4328_v56 }
 0x228   :  { %3128 = vmatpush2.bf16.msra.mxu0 %v4278_v63  ;;  %v4337_v63 = vld [vmem:[#allocation7 + $0x28] sm:$0xff]  }
 0x229   :  { %3129 = vmatprep.subr.bf16.mxu0 %v4283_v19  ;;  %3171 = vmatpush2.bf16.msra.mxu1 %v4326_v58  ;;  %v4339_v19 = vld [vmem:[#allocation7 + $0x20] sm:$0xff]   ;;  %v4341_v58 = vld [vmem:[#allocation7 + $0x18] sm:$0xff]  }
 0x22a   :  { %3172 = vmatprep.subr.bf16.mxu1 %v4331_v4  ;;  %v4346_v4 = vld [vmem:[#allocation7 + $0x40] sm:$0xff]  }
 0x22c   :  { %3130 = vmatpush2.bf16.msra.mxu0 %v4281_v28 }
 0x22d   :  { %3173 = vmatpush2.bf16.msra.mxu1 %v4329_v3  ;;  %3815 = vmatprep.subr.bf16.mxu0 %v4332_v9  ;;  %v4345_v3 = vld [vmem:[#allocation7 + $0x8] sm:$0xff]  }
 0x22e   :  { %v81_v9 = vld [vmem:[%s4623_s5 + $0xc] sm:$0x3] }
 0x22f   :  { %v2460_v61 = vpop.f32.mrf.mxu0  ;;  %v2503_v34 = vpop.f32.mrf.mxu1 }
 0x230   :  { %v2461_v36 = vadd.f32 %v2460_v61, %v2418_v14 }
 0x231   :  { %v2462_v37 = vpop.f32.mrf.mxu0  ;;  %v2505_v42 = vpop.f32.mrf.mxu1 }
 0x232   :  { %v2463_v41 = vadd.f32 %v2462_v37, %v2420_v0  ;;  %v2504_v48 = vadd.f32 %v2503_v34, %v2461_v36 }
 0x233   :  { %v2464_v44 = vpop.f32.mrf.mxu0  ;;  %v2507_v26 = vpop.f32.mrf.mxu1 }
 0x234   :  { %v2506_v46 = vadd.f32 %v2505_v42, %v2463_v41  ;;  %v2465_v35 = vadd.f32 %v2464_v44, %v2422_v39  ;;  %v2684_v50 = vmul.f32 0.1, %v2504_v48 }
 0x235   :  { %v2466_v49 = vpop.f32.mrf.mxu0  ;;  %v2509_v53 = vpop.f32.mrf.mxu1 }
 0x236   :  { %v2508_v13 = vadd.f32 %v2507_v26, %v2465_v35  ;;  %v2467_v52 = vadd.f32 %v2466_v49, %v2424_v45  ;;  %v2685_v54 = vmul.f32 0.1, %v2506_v46  ;;  %v2692_v6 = vmax.f32 %v2504_v48, %v2684_v50 }
 0x238   :  { %v2688_v55 = vmul.f32 0.1, %v2508_v13  ;;  %v2510_v40 = vadd.f32 %v2509_v53, %v2467_v52  ;;  %v2693_v60 = vmax.f32 %v2506_v46, %v2685_v54 }
 0x23a   :  { %v2689_v57 = vmul.f32 0.1, %v2510_v40  ;;  %v2696_v59 = vmax.f32 %v2508_v13, %v2688_v55 }
 0x23c   :  { %v2697_v62 = vmax.f32 %v2510_v40, %v2689_v57  ;;  %v2700_v8 = vpack.c.bf16 %v2696_v59, %v2692_v6  ;;  %v4340_v57 = vld [vmem:[#allocation7 + $0x58] sm:$0xff]   ;;  %v4342_v59 = vld [vmem:[#allocation7 + $0x50] sm:$0xff]   ;;  %v4347_v6 = vld [vmem:[#allocation7] sm:$0xff]  }
 0x23e   :  { %v2701_v7 = vpack.c.bf16 %v2697_v62, %v2693_v60  ;;  %v4343_v60 = vld [vmem:[#allocation7 + $0x10] sm:$0xff]   ;;  %v4344_v62 = vld [vmem:[#allocation7 + $0x48] sm:$0xff]  }
 0x240   :  { %3131 = vmatprep.mubr.bf16.mxu0 %v2701_v7 }
 0x241   :  { %3132 = vmatmul.mubr.bf16.vlgmr.msra.gmra.mxu0 %v2700_v8 }
 0x242   :  { %3816 = vmatpush3.bf16.msra.mxu0 %v4333_v11  ;;  %v2776_v11 = vrot.slane %v81_v9, %v4518_v23 }
 0x243   :  { %3817 = vmatprep.subr.bf16.mxu0 %v4334_v12  ;;  %v2772_v12 = vrot.slane %v81_v9, %v4521_v24 }
 0x246   :  { %3818 = vmatpush3.bf16.msra.mxu0 %v4335_v15 }
 0x247   :  { %3819 = vmatprep.subr.bf16.mxu0 %v4336_v16 }
 0x24a   :  { %3820 = vmatpush3.bf16.msra.mxu0 %v4337_v63 }
 0x24b   :  { %3821 = vmatprep.subr.bf16.mxu0 %v4338_v18 }
 0x24e   :  { %3822 = vmatpush3.bf16.msra.mxu0 %v4339_v19 }
 0x24f   :  { %3823 = vmatprep.subr.bf16.mxu0 %v4340_v57 }
 0x252   :  { %3824 = vmatpush3.bf16.msra.mxu0 %v4341_v58 }
 0x253   :  { %3825 = vmatprep.subr.bf16.mxu0 %v4342_v59 }
 0x256   :  { %3826 = vmatpush3.bf16.msra.mxu0 %v4343_v60 }
 0x257   :  { %3827 = vmatprep.subr.bf16.mxu0 %v4344_v62 }
 0x25a   :  { %3828 = vmatpush3.bf16.msra.mxu0 %v4345_v3 }
 0x25b   :  { %3829 = vmatprep.subr.bf16.mxu0 %v4346_v4 }
 0x25e   :  { %3830 = vmatpush3.bf16.msra.mxu0 %v4347_v6 }
 0x26f   :  { %v2546_v2 = vpop.f32.mrf.mxu0 }
 0x270   :  { %v2589_v20 = vpop.f32.mrf.mxu1  ;;  %v2547_v10 = vadd.f32 %v2546_v2, %v1051_v1 }
 0x271   :  { %v2548_v21 = vpop.f32.mrf.mxu0 }
 0x272   :  { %v2591_v28 = vpop.f32.mrf.mxu1  ;;  %v2549_v31 = vadd.f32 %v2548_v21, %v1055_v29  ;;  %v2590_v0 = vadd.f32 %v2589_v20, %v2547_v10 }
 0x273   :  { %v2550_v5 = vpop.f32.mrf.mxu0 }
 0x274   :  { %v2593_v30 = vpop.f32.mrf.mxu1  ;;  %v2551_v14 = vadd.f32 %v2550_v5, %v1051_v1  ;;  %v2592_v34 = vadd.f32 %v2591_v28, %v2549_v31 }
 0x275   :  { %v2552_v32 = vpop.f32.mrf.mxu0 }
 0x276   :  { %v2595_v61 = vpop.f32.mrf.mxu1  ;;  %v2553_v36 = vadd.f32 %v2552_v32, %v1055_v29  ;;  %v2594_v41 = vadd.f32 %v2593_v30, %v2551_v14 }
 0x278   :  { %v2596_v43 = vadd.f32 %v2595_v61, %v2553_v36 }
 0x2af   :  { %v2632_v33 = vpop.f32.mrf.mxu0 }
 0x2b0   :  { %v2675_v37 = vpop.f32.mrf.mxu1  ;;  %v2633_v38 = vadd.f32 %v2632_v33, %v2590_v0 }
 0x2b1   :  { %v2634_v39 = vpop.f32.mrf.mxu0 }
 0x2b2   :  { %v2635_v27 = vadd.f32 %v2634_v39, %v2592_v34  ;;  %v2677_v42 = vpop.f32.mrf.mxu1  ;;  %v2676_v45 = vadd.f32 %v2675_v37, %v2633_v38  ;;  %v3789_v38 = vld [vmem:[%s4623_s5 + $0xe] ss:$0 sm:$0xff] }
 0x2b3   :  { %v2636_v22 = vpop.f32.mrf.mxu0 }
 0x2b4   :  { %v2678_v25 = vadd.f32 %v2677_v42, %v2635_v27  ;;  %v2637_v17 = vadd.f32 %v2636_v22, %v2594_v41  ;;  %v2679_v44 = vpop.f32.mrf.mxu1  ;;  %v2686_v52 = vmul.f32 0.1, %v2676_v45 }
 0x2b5   :  { %v2638_v46 = vpop.f32.mrf.mxu0 }
 0x2b6   :  { %v2680_v35 = vadd.f32 %v2679_v44, %v2637_v17  ;;  %v2639_v26 = vadd.f32 %v2638_v46, %v2596_v43  ;;  %v2681_v48 = vpop.f32.mrf.mxu1  ;;  %v2687_v49 = vmul.f32 0.1, %v2678_v25  ;;  %v2694_v40 = vmax.f32 %v2676_v45, %v2686_v52 }
 0x2b8   :  { %v2690_v51 = vmul.f32 0.1, %v2680_v35  ;;  %v2682_v13 = vadd.f32 %v2681_v48, %v2639_v26  ;;  %v2695_v54 = vmax.f32 %v2678_v25, %v2687_v49 }
 0x2ba   :  { %v2691_v47 = vmul.f32 0.1, %v2682_v13  ;;  %v2698_v53 = vmax.f32 %v2680_v35, %v2690_v51 }
 0x2bc   :  { %v2699_v55 = vmax.f32 %v2682_v13, %v2691_v47  ;;  %v2702_v56 = vpack.c.bf16 %v2698_v53, %v2694_v40 }
 0x2be   :  { %v2703_v50 = vpack.c.bf16 %v2699_v55, %v2695_v54 }
 0x2c0   :  { %3174 = vmatprep.mubr.bf16.mxu1 %v2703_v50 }
 0x2c1   :  { %3175 = vmatmul.mubr.bf16.vlgmr.msra.gmra.mxu1 %v2702_v56 }
 0x301   :  { %v3133_v7 = vpop.f32.mrf.mxu0 }
 0x302   :  { %v3134_v18 = vadd.f32 %v3133_v7, %v2772_v12 }
 0x303   :  { %v3135_v8 = vpop.f32.mrf.mxu0 }
 0x304   :  { %v3136_v63 = vadd.f32 %v3135_v8, %v2776_v11 }
 0x305   :  { %v3137_v15 = vpop.f32.mrf.mxu0 }
 0x306   :  { %v3138_v20 = vadd.f32 %v3137_v15, %v2772_v12 }
 0x307   :  { %v3139_v19 = vpop.f32.mrf.mxu0 }
 0x308   :  { %v3140_v29 = vadd.f32 %v3139_v19, %v2776_v11 }
 0x381   :  { %v3176_v16 = vpop.f32.mrf.mxu1 }
 0x382   :  { %v3177_v28 = vadd.f32 %v3176_v16, %v3134_v18 }
 0x383   :  { %v3178_v2 = vpop.f32.mrf.mxu1 }
 0x384   :  { %v3179_v21 = vadd.f32 %v3178_v2, %v3136_v63  ;;  %v3185_v14 = vmul.f32 0.1, %v3177_v28 }
 0x385   :  { %v3180_v1 = vpop.f32.mrf.mxu1 }
 0x386   :  { %v3181_v5 = vadd.f32 %v3180_v1, %v3138_v20  ;;  %v3186_v10 = vmul.f32 0.1, %v3179_v21  ;;  %v3189_v33 = vmax.f32 %v3177_v28, %v3185_v14 }
 0x387   :  { %v3182_v30 = vpop.f32.mrf.mxu1 }
 0x388   :  { %v3187_v31 = vmul.f32 0.1, %v3181_v5  ;;  %v3183_v32 = vadd.f32 %v3182_v30, %v3140_v29  ;;  %v3190_v24 = vmax.f32 %v3179_v21, %v3186_v10 }
 0x38a   :  { %v3188_v23 = vmul.f32 0.1, %v3183_v32  ;;  %v3191_v61 = vmax.f32 %v3181_v5, %v3187_v31 }
 0x38c   :  { %v3192_v0 = vmax.f32 %v3183_v32, %v3188_v23  ;;  %v3193_v36 = vpack.c.bf16 %v3191_v61, %v3189_v33 }
 0x38e   :  { %v3194_v34 = vpack.c.bf16 %v3192_v0, %v3190_v24 }
 0x390   :  { %3361 = vmatprep.mubr.bf16.mxu0 %v3194_v34 }
 0x391   :  { %3362 = vmatmul.mubr.bf16.vlgmr.msra.gmra.mxu0 %v3193_v36 }
 0x451   :  { %v3831_v37 = vpop.f32.mrf.mxu0 }
 0x453   :  { %v3832_v39 = vpop.f32.mrf.mxu0 }
 0x454   :  { %v3833_v41 = vadd.f32 %v3832_v39, %v3831_v37 }
 0x455   :  { %v3834_v27 = vpop.f32.mrf.mxu0 }
 0x456   :  { %v3364_v42 = vadd.f32 %v3833_v41, %v3789_v38 }
 0x457   :  { %v3835_v22 = vpop.f32.mrf.mxu0 }
 0x458   :  { %v3836_v43 = vadd.f32 %v3835_v22, %v3834_v27  ;;  %v3370_v25 = vmul.f32 0.1, %v3364_v42 }
 0x45a   :  { %v3367_v17 = vadd.f32 %v3836_v43, %v3789_v38  ;;  %v3372_v45 = vmax.f32 %v3364_v42, %v3370_v25 }
 0x45c   :  { %v3371_v44 = vmul.f32 0.1, %v3367_v17 }
 0x45e   :  { %v3373_v46 = vmax.f32 %v3367_v17, %v3371_v44 }
 0x460   :  { %v3813_v35 = vpack.c.bf16 %v3373_v46, %v3372_v45 }
 0x462   :  { %3814 = vst [vmem:[%s4624_s6] sm:$0xff] %v3813_v35  }
 0x463   :  { %3388 = vsyncpa [#allocation3], 1 }
 0x464   :  { %3389 = vsyncpa [#allocation5], 1 }
 0x465   :  { %3390 = vsyncpa [#allocation8], 1 }

</bundles_post_ra>
